<compile_context>
chip_gen: v7x
topology: tpu7x:2x2x1
jax: 0.10.0
libtpu: 0.0.40
codegen_flags: <defaults>
</compile_context>

<pallas_src>
import jax
import jax.numpy as jnp
from jax.experimental import pallas as pl
from jax.experimental.pallas import tpu as pltpu

_MB = 1024 * 1024


def _round_up(x, m):
    return ((x + m - 1) // m) * m


def _vmem_capacity_bytes():
    try:
        cap = int(getattr(pltpu.get_tpu_info(), "vmem_capacity_bytes"))
        if cap > 0:
            return cap
    except Exception:
        pass
    return 64 * _MB          # conservative default = v7x per-TensorCore VMEM


def _vmem_budget_bytes():
    # ~20% headroom for Mosaic-internal scratch / elementwise temps:
    # ~51 MiB on v7x (64 MiB/TC), ~102 MiB on v5e/v6e (128 MiB).
    return max(32 * _MB, int(0.8 * _vmem_capacity_bytes()))


def choose_vocab_tile(hidden, vocab, budget_bytes):
    # double-buffered (H, tv) bf16 weight tile should take <= ~40% of budget
    tv_cap = int(0.4 * budget_bytes) // (2 * hidden * 2)
    tv = 128
    for cand in (4096, 2048, 1024, 512, 256, 128):
        if cand <= tv_cap:
            tv = cand
            break
    return min(tv, _round_up(vocab, 128))


def prepare_vocab_weights(w_vocab, *, vocab_tile=None, budget_bytes=None):
    """Pad vocab dim to a multiple of the vocab tile and cast to bf16 ONCE.

    Hoisted out of the per-step loss call: the per-call f32->bf16 cast + pad of
    the (H, V) matrix would otherwise cost an extra full weight pass over HBM
    on every training step.
    """
    hidden, vocab = w_vocab.shape
    if budget_bytes is None:
        budget_bytes = _vmem_budget_bytes()
    if vocab_tile is None:
        vocab_tile = choose_vocab_tile(hidden, vocab, budget_bytes)
    v_pad = _round_up(vocab, vocab_tile)
    w_bf = w_vocab.astype(jnp.bfloat16)
    if v_pad != vocab:
        w_bf = jnp.pad(w_bf, ((0, 0), (0, v_pad - vocab)))
    return w_bf, vocab, vocab_tile


# ----------------------------------------------------------------------------
# Pallas kernel: fused vocab projection + online log-softmax + target gather +
# masked NLL.  Grid = (vocab_blocks OUTER, row_blocks INNER):
#   - the W block index depends only on the outer counter -> W streams from HBM
#     exactly once per call; only small h/tgt/mask tiles re-stream per vocab
#     block,
#   - per-row running (max, sum-exp, target-logit) accumulators for ALL rows
#     live in VMEM scratch and are sliced by the row-block index.
# ----------------------------------------------------------------------------
def _make_nll_kernel(v_actual, v_pad, vocab_tile, row_tile):
    has_vocab_pad = (v_pad != v_actual)      # static

    def kernel(h_ref, w_ref, tgt_ref, mask_ref, nll_ref, m_sc, l_sc, t_sc):
        j = pl.program_id(0)                 # vocab block (reduction, ordered)
        i = pl.program_id(1)                 # row block   ("parallel")
        r0 = pl.multiple_of(i * row_tile, row_tile)
        rows = pl.ds(r0, row_tile)

        @pl.when(j == 0)
        def _init():
            m_sc[rows, :] = jnp.full((row_tile, 1), -jnp.inf, jnp.float32)
            l_sc[rows, :] = jnp.zeros((row_tile, 1), jnp.float32)
            t_sc[rows, :] = jnp.zeros((row_tile, 1), jnp.float32)

        # MXU matmul: bf16 x bf16 -> f32 (row_tile, vocab_tile)
        logits = jnp.dot(h_ref[...], w_ref[...],
                         preferred_element_type=jnp.float32)

        # block-local column index (target side is shifted instead of adding
        # j*vocab_tile to the whole (tm, tv) iota)
        col = jax.lax.broadcasted_iota(jnp.int32, logits.shape, 1)

        if has_vocab_pad:
            # zero-padded W columns would contribute exp(0) to the logsumexp
            # denominator -> push them to -1e30 (finite, so no inf-inf NaNs).
            valid = v_actual - j * vocab_tile
            logits = jnp.where(col < valid, logits, -1e30)

        # online-softmax update for this vocab block
        m_prev = m_sc[rows, :]
        blk_max = jnp.max(logits, axis=-1, keepdims=True)
        m_new = jnp.maximum(m_prev, blk_max)
        l_sc[rows, :] = (l_sc[rows, :] * jnp.exp(m_prev - m_new)
                         + jnp.sum(jnp.exp(logits - m_new), axis=-1,
                                   keepdims=True))
        m_sc[rows, :] = m_new

        # gather the target logit (padded rows carry tgt=0, mask=0)
        tgt_local = tgt_ref[...] - j * vocab_tile
        t_sc[rows, :] = t_sc[rows, :] + jnp.sum(
            jnp.where(col == tgt_local, logits, 0.0), axis=-1, keepdims=True)

        @pl.when(j == pl.num_programs(0) - 1)
        def _finalize():
            lse = m_sc[rows, :] + jnp.log(l_sc[rows, :])
            nll_ref[...] = (lse - t_sc[rows, :]) * mask_ref[...]

    return kernel


def masked_nll_sum(h, w_bf, v_actual, tgt, mask, *, vocab_tile,
                   row_tile=None, budget_bytes=None):
    """sum over rows of  -log_softmax(h @ w)[row, tgt[row]] * mask[row].

    h: (N, H) float, w_bf: (H, V_pad) bf16 pre-padded to a vocab_tile multiple,
    tgt: (N, 1) int32, mask: (N, 1) float32.
    """
    N, H = h.shape
    v_pad = w_bf.shape[1]
    assert v_pad % vocab_tile == 0

    if budget_bytes is None:
        budget_bytes = _vmem_budget_bytes()

    # row tile: big enough to fill the MXU / amortise per-grid-step overhead,
    # small enough to keep >= 2 row blocks for v7x's two TensorCores.
    if row_tile is None:
        if N <= 256:
            row_tile = 128
        elif N <= 2048:
            row_tile = 256
        else:
            row_tile = 512

    def fits(tm):
        n_pad = _round_up(max(N, 1), tm)
        est = (2 * tm * H * 2               # h tile (bf16), double-buffered
               + 2 * H * vocab_tile * 2     # W tile (bf16), double-buffered
               + 2 * 2 * tm * 128 * 4       # tgt/mask (.,1) tiles (128-lane pad)
               + 2 * tm * 128 * 4           # per-row nll output tile
               + 3 * n_pad * 128 * 4        # m/l/t accumulators (all rows)
               + 3 * tm * vocab_tile * 4    # f32 logits + exp/where temporaries
               + 2 * _MB)                   # Mosaic internal scratch headroom
        return est <= budget_bytes

    while row_tile > 128 and not fits(row_tile):
        row_tile //= 2

    n_row_blocks = -(-N // row_tile)
    n_pad = n_row_blocks * row_tile
    n_vocab_blocks = v_pad // vocab_tile
    # NOTE: accumulator scratch costs ~1.5 KB/row; for N >> 32K rows, chunk the
    # rows at the wrapper level before calling this function.

    h_bf = h.astype(jnp.bfloat16)
    tgt = tgt.astype(jnp.int32)
    mask = mask.astype(jnp.float32)
    if n_pad != N:
        pad = n_pad - N
        h_bf = jnp.pad(h_bf, ((0, pad), (0, 0)))
        tgt = jnp.pad(tgt, ((0, pad), (0, 0)))    # padded rows: tgt=0, mask=0
        mask = jnp.pad(mask, ((0, pad), (0, 0)))

    kernel = _make_nll_kernel(v_actual, v_pad, vocab_tile, row_tile)

    nll_rows = pl.pallas_call(
        kernel,
        out_shape=jax.ShapeDtypeStruct((n_pad, 1), jnp.float32),
        grid_spec=pltpu.PrefetchScalarGridSpec(
            num_scalar_prefetch=0,
            grid=(n_vocab_blocks, n_row_blocks),
            in_specs=[
                pl.BlockSpec((row_tile, H), lambda j, i: (i, 0)),    # hidden
                pl.BlockSpec((H, vocab_tile), lambda j, i: (0, j)),  # W tile
                pl.BlockSpec((row_tile, 1), lambda j, i: (i, 0)),    # targets
                pl.BlockSpec((row_tile, 1), lambda j, i: (i, 0)),    # mask
            ],
            out_specs=pl.BlockSpec((row_tile, 1), lambda j, i: (i, 0)),
            scratch_shapes=[pltpu.VMEM((n_pad, 1), jnp.float32),   # running max
                            pltpu.VMEM((n_pad, 1), jnp.float32),   # running sumexp
                            pltpu.VMEM((n_pad, 1), jnp.float32)],  # target logit
        ),
        compiler_params=pltpu.CompilerParams(
            dimension_semantics=("arbitrary", "parallel"),
            vmem_limit_bytes=int(budget_bytes)),
    )(h_bf, w_bf, tgt, mask)

    return jnp.sum(nll_rows)


# ----------------------------------------------------------------------------
# Synthetic captioning "model" (glue) + deterministic parameter init
# ----------------------------------------------------------------------------
def init_params(key, *, d_fc, d_att, d_sp, hidden, vocab, n_types):
    ks = jax.random.split(key, 6)
    s = 0.05
    return {
        "W_emb":   s * jax.random.normal(ks[0], (vocab, hidden), jnp.float32),
        "W_fc":    s * jax.random.normal(ks[1], (d_fc, hidden), jnp.float32),
        "W_att":   s * jax.random.normal(ks[2], (d_att, hidden), jnp.float32),
        "W_sp":    s * jax.random.normal(ks[3], (d_sp, hidden), jnp.float32),
        "W_vocab": s * jax.random.normal(ks[4], (hidden, vocab), jnp.float32),
        "W_type":  s * jax.random.normal(ks[5], (hidden, n_types), jnp.float32),
    }


def model_forward(params, fc_feats, att_feats, spacial_feats, labels_in,
                  att_masks):
    """Toy decoder producing per-token hidden states + a news-type hidden state.

    The expensive vocab projection / log-softmax lives in the Pallas kernel.
    """
    emb = params["W_emb"][labels_in]                        # (B, L, H)
    fc_h = fc_feats @ params["W_fc"]                        # (B, H)
    att_h = att_feats @ params["W_att"]                     # (B, A, H)
    sp_h = spacial_feats @ params["W_sp"]                   # (B, A, H)
    am = att_masks[..., None]                               # (B, A, 1)
    denom = jnp.maximum(jnp.sum(am, axis=1), 1.0)           # (B, 1)
    att_pool = jnp.sum(att_h * am, axis=1) / denom
    sp_pool = jnp.sum(sp_h * am, axis=1) / denom
    ctx = fc_h + att_pool + sp_pool                         # (B, H)
    h = jnp.tanh(emb + ctx[:, None, :])                     # (B, L, H)
    type_h = jnp.tanh(ctx)                                  # (B, H)
    return h, type_h


# ----------------------------------------------------------------------------
# LossWrapper.forward (supervised branch)
# ----------------------------------------------------------------------------
def loss_wrapper_forward(params, fc_feats, att_feats, spacial_feats, labels,
                         masks, att_masks, news_type, *, vocab_weights=None,
                         sc_flag=False, struc_flag=False, rollout_flag=0):
    # TODO(synk): struc_flag / sc_flag / rollout_flag==1 branches need
    # autoregressive sampling + CIDEr self-critical rewards (host-side), which
    # have no clean Pallas equivalent; only the LM + news-type criterion branch
    # is implemented.
    assert (not sc_flag) and (not struc_flag) and (rollout_flag != 1)

    if vocab_weights is None:
        vocab_weights = prepare_vocab_weights(params["W_vocab"])
    w_bf, v_actual, vocab_tile = vocab_weights

    B, Lp1 = labels.shape
    L = Lp1 - 1
    h, type_h = model_forward(params, fc_feats, att_feats, spacial_feats,
                              labels[:, :-1], att_masks)
    H = h.shape[-1]

    # ---- language loss: masked NLL over vocab (fused Pallas kernel) ----
    h_flat = h.reshape(B * L, H)
    tgt = labels[:, 1:].reshape(B * L, 1).astype(jnp.int32)
    msk = masks[:, 1:].reshape(B * L, 1).astype(jnp.float32)
    nll_sum = masked_nll_sum(h_flat, w_bf, v_actual, tgt, msk,
                             vocab_tile=vocab_tile)
    cnt = jnp.sum(msk)                       # trivial; keep in XLA
    loss_lang = nll_sum / cnt

    # ---- news-type loss: (B, n_types) head is tiny -> plain JAX ----
    tlogp = jax.nn.log_softmax(type_h @ params["W_type"], axis=-1)
    ttok = jnp.take_along_axis(tlogp, news_type[:, None].astype(jnp.int32),
                               axis=-1)[:, 0]
    loss_type = jnp.mean(-ttok)

    loss = loss_lang + loss_type
    return {"loss": loss, "loss_lang": loss_lang, "loss_type": loss_type}


# ----------------------------------------------------------------------------
# Pure-JAX f32 reference for the criterion (for correctness check)
# ----------------------------------------------------------------------------
def _ref_losses(params, fc_feats, att_feats, spacial_feats, labels, masks,
                att_masks, news_type):
    h, type_h = model_forward(params, fc_feats, att_feats, spacial_feats,
                              labels[:, :-1], att_masks)
    logp = jax.nn.log_softmax(h @ params["W_vocab"], axis=-1)      # (B, L, V)
    tgt = labels[:, 1:]
    tok = jnp.take_along_axis(logp, tgt[..., None], axis=-1)[..., 0]
    m = masks[:, 1:]
    loss_lang = jnp.sum(-tok * m) / jnp.sum(m)
    tlogp = jax.nn.log_softmax(type_h @ params["W_type"], axis=-1)
    ttok = jnp.take_along_axis(tlogp, news_type[:, None], axis=-1)[:, 0]
    loss_type = jnp.mean(-ttok)
    return loss_lang, loss_type


def _run_case(case_idx, *, B, A, D_fc, D_att, D_sp, H, V, T, Lp1,
              vocab_tile=None):
    key = jax.random.fold_in(jax.random.PRNGKey(0), case_idx)
    k_par, k_fc, k_att, k_sp, k_lab, k_nt = jax.random.split(key, 6)

    params = init_params(k_par, d_fc=D_fc, d_att=D_att, d_sp=D_sp,
                         hidden=H, vocab=V, n_types=T)

    fc_feats = jax.random.normal(k_fc, (B, D_fc), jnp.float32)
    att_feats = jax.random.normal(k_att, (B, A, D_att), jnp.float32)
    spacial_feats = jax.random.normal(k_sp, (B, A, D_sp), jnp.float32)
    labels = jax.random.randint(k_lab, (B, Lp1), 0, V, dtype=jnp.int32)
    masks = jnp.broadcast_to(
        (jnp.arange(Lp1)[None, :] < (Lp1 - 2)).astype(jnp.float32), (B, Lp1))
    att_masks = jnp.ones((B, A), jnp.float32)
    news_type = jax.random.randint(k_nt, (B,), 0, T, dtype=jnp.int32)

    # hoisted once per training run: pad V to the vocab tile + cast to bf16
    vocab_weights = prepare_vocab_weights(params["W_vocab"],
                                          vocab_tile=vocab_tile)

    out = loss_wrapper_forward(params, fc_feats, att_feats, spacial_feats,
                               labels, masks, att_masks, news_type,
                               vocab_weights=vocab_weights,
                               sc_flag=False, struc_flag=False, rollout_flag=0)
    jax.block_until_ready(out["loss"])

    ref_lang, ref_type = _ref_losses(params, fc_feats, att_feats, spacial_feats,
                                     labels, masks, att_masks, news_type)
    # kernel feeds the MXU bf16 operands with f32 accumulation; reference is f32
    assert jnp.allclose(out["loss_lang"], ref_lang, atol=1e-2, rtol=1e-3), (
        case_idx, float(out["loss_lang"]), float(ref_lang))
    assert jnp.allclose(out["loss_type"], ref_type, atol=1e-3, rtol=1e-3), (
        case_idx, float(out["loss_type"]), float(ref_type))
    assert jnp.allclose(out["loss"], ref_lang + ref_type, atol=1e-2, rtol=1e-3)


if __name__ == "__main__":
    # Case 1: module-consistent tiny shapes (single row / vocab block).
    _run_case(0, B=2, A=16, D_fc=32, D_att=32, D_sp=8, H=32, V=128, T=16,
              Lp1=9)
    # Case 2: exercises multiple row blocks, multiple vocab blocks and the
    # padded-vocab masking path (V=300 -> V_pad=384 with vocab_tile=128).
    _run_case(1, B=6, A=16, D_fc=32, D_att=32, D_sp=8, H=32, V=300, T=16,
              Lp1=25, vocab_tile=128)
    print("KERNEL_OK")
</pallas_src>

<mosaic_0001>
module attributes {stable_mosaic.version = 11 : i64} {
  func.func @kernel(%arg0: i32, %arg1: i32, %arg2: memref<128x32xbf16, #tpu.memory_space<vmem>>, %arg3: memref<32x128xbf16, #tpu.memory_space<vmem>>, %arg4: memref<128x1xi32, #tpu.memory_space<vmem>>, %arg5: memref<128x1xf32, #tpu.memory_space<vmem>>, %arg6: memref<128x1xf32, #tpu.memory_space<vmem>>, %arg7: memref<128x1xf32, #tpu.memory_space<vmem>>, %arg8: memref<128x1xf32, #tpu.memory_space<vmem>>, %arg9: memref<128x1xf32, #tpu.memory_space<vmem>>) attributes {dimension_semantics = [#tpu.dimension_semantics<arbitrary>, #tpu.dimension_semantics<parallel>], iteration_bounds = array<i64: 1, 1>, scalar_prefetch = 0 : i64, scratch_operands = 3 : i64, tpu.core_type = #tpu.core_type<tc>, window_params = [{transform_indices = @transform_0, window_bounds = array<i64: 128, 32>}, {transform_indices = @transform_1, window_bounds = array<i64: 32, 128>}, {transform_indices = @transform_2, window_bounds = array<i64: 128, 1>}, {transform_indices = @transform_3, window_bounds = array<i64: 128, 1>}, {transform_indices = @transform_4, window_bounds = array<i64: 128, 1>}]} {
    %c128_i32 = arith.constant 128 : i32
    %0 = arith.muli %arg1, %c128_i32 : i32
    %1 = tpu.assume_multiple %0, 128 : i32
    %c0_i32 = arith.constant 0 : i32
    %2 = arith.cmpi eq, %arg0, %c0_i32 : i32
    %3 = arith.extui %2 : i1 to i32
    %c0_i32_0 = arith.constant 0 : i32
    %4 = arith.cmpi ne, %3, %c0_i32_0 : i32
    scf.if %4 {
      %cst_19 = arith.constant 0xFF800000 : f32
      %47 = vector.broadcast %cst_19 : f32 to vector<128x1xf32>
      %48 = arith.index_cast %1 : i32 to index
      %c0_20 = arith.constant 0 : index
      %49 = vector.load %arg7[%48, %c0_20] : memref<128x1xf32, #tpu.memory_space<vmem>>, vector<128x1xf32>
      tpu.vector_store %arg7[%48, %c0_20], %47 {strides = array<i32>} : memref<128x1xf32, #tpu.memory_space<vmem>>, vector<128x1xf32>,
      %cst_21 = arith.constant 0.000000e+00 : f32
      %50 = vector.broadcast %cst_21 : f32 to vector<128x1xf32>
      %51 = arith.index_cast %1 : i32 to index
      %c0_22 = arith.constant 0 : index
      %52 = vector.load %arg8[%51, %c0_22] : memref<128x1xf32, #tpu.memory_space<vmem>>, vector<128x1xf32>
      tpu.vector_store %arg8[%51, %c0_22], %50 {strides = array<i32>} : memref<128x1xf32, #tpu.memory_space<vmem>>, vector<128x1xf32>,
      %cst_23 = arith.constant 0.000000e+00 : f32
      %53 = vector.broadcast %cst_23 : f32 to vector<128x1xf32>
      %54 = arith.index_cast %1 : i32 to index
      %c0_24 = arith.constant 0 : index
      %55 = vector.load %arg9[%54, %c0_24] : memref<128x1xf32, #tpu.memory_space<vmem>>, vector<128x1xf32>
      tpu.vector_store %arg9[%54, %c0_24], %53 {strides = array<i32>} : memref<128x1xf32, #tpu.memory_space<vmem>>, vector<128x1xf32>,
    } else {
    }
    %c0 = arith.constant 0 : index
    %c0_1 = arith.constant 0 : index
    %5 = vector.load %arg2[%c0, %c0_1] : memref<128x32xbf16, #tpu.memory_space<vmem>>, vector<128x32xbf16>
    %c0_2 = arith.constant 0 : index
    %c0_3 = arith.constant 0 : index
    %6 = vector.load %arg3[%c0_2, %c0_3] : memref<32x128xbf16, #tpu.memory_space<vmem>>, vector<32x128xbf16>
    %cst = arith.constant dense<0.000000e+00> : vector<128x128xf32>
    %7 = tpu.matmul %5, %6, %cst {dimension_numbers = #tpu.dot_dimension_numbers<[1], [0], [0], [1], [0, 0, 1, 1], [], []>} : vector<128x32xbf16>, vector<32x128xbf16>, vector<128x128xf32> -> vector<128x128xf32>
    %8 = tpu.iota {dimensions = array<i32: 1>} : vector<128x128xi32>
    %9 = arith.index_cast %1 : i32 to index
    %c0_4 = arith.constant 0 : index
    %10 = vector.load %arg7[%9, %c0_4] : memref<128x1xf32, #tpu.memory_space<vmem>>, vector<128x1xf32>
    %cst_5 = arith.constant dense<0xFF800000> : vector<128xf32>
    %11 = vector.multi_reduction <maximumf>, %7, %cst_5 [1] : vector<128x128xf32> to vector<128xf32>
    %12 = vector.shape_cast %11 : vector<128xf32> to vector<128x1xf32>
    %13 = arith.maximumf %10, %12 : vector<128x1xf32>
    %14 = arith.index_cast %1 : i32 to index
    %c0_6 = arith.constant 0 : index
    %15 = vector.load %arg8[%14, %c0_6] : memref<128x1xf32, #tpu.memory_space<vmem>>, vector<128x1xf32>
    %16 = arith.subf %10, %13 : vector<128x1xf32>
    %17 = math.exp %16 : vector<128x1xf32>
    %18 = arith.mulf %15, %17 : vector<128x1xf32>
    %19 = vector.broadcast %13 : vector<128x1xf32> to vector<128x128xf32>
    %20 = arith.subf %7, %19 : vector<128x128xf32>
    %21 = math.exp %20 : vector<128x128xf32>
    %cst_7 = arith.constant dense<0.000000e+00> : vector<128xf32>
    %22 = vector.multi_reduction <add>, %21, %cst_7 [1] : vector<128x128xf32> to vector<128xf32>
    %23 = vector.shape_cast %22 : vector<128xf32> to vector<128x1xf32>
    %24 = arith.addf %18, %23 : vector<128x1xf32>
    %25 = arith.index_cast %1 : i32 to index
    %c0_8 = arith.constant 0 : index
    %26 = vector.load %arg8[%25, %c0_8] : memref<128x1xf32, #tpu.memory_space<vmem>>, vector<128x1xf32>
    tpu.vector_store %arg8[%25, %c0_8], %24 {strides = array<i32>} : memref<128x1xf32, #tpu.memory_space<vmem>>, vector<128x1xf32>,
    %27 = arith.index_cast %1 : i32 to index
    %c0_9 = arith.constant 0 : index
    %28 = vector.load %arg7[%27, %c0_9] : memref<128x1xf32, #tpu.memory_space<vmem>>, vector<128x1xf32>
    tpu.vector_store %arg7[%27, %c0_9], %13 {strides = array<i32>} : memref<128x1xf32, #tpu.memory_space<vmem>>, vector<128x1xf32>,
    %c0_10 = arith.constant 0 : index
    %c0_11 = arith.constant 0 : index
    %29 = vector.load %arg4[%c0_10, %c0_11] : memref<128x1xi32, #tpu.memory_space<vmem>>, vector<128x1xi32>
    %c128_i32_12 = arith.constant 128 : i32
    %30 = arith.muli %arg0, %c128_i32_12 : i32
    %31 = vector.broadcast %30 : i32 to vector<128x1xi32>
    %32 = arith.subi %29, %31 : vector<128x1xi32>
    %33 = arith.index_cast %1 : i32 to index
    %c0_13 = arith.constant 0 : index
    %34 = vector.load %arg9[%33, %c0_13] : memref<128x1xf32, #tpu.memory_space<vmem>>, vector<128x1xf32>
    %35 = vector.broadcast %32 : vector<128x1xi32> to vector<128x128xi32>
    %36 = arith.cmpi eq, %8, %35 : vector<128x128xi32>
    %cst_14 = arith.constant 0.000000e+00 : f32
    %37 = vector.broadcast %cst_14 : f32 to vector<128x128xf32>
    %38 = arith.select %36, %7, %37 : vector<128x128xi1>, vector<128x128xf32>
    %cst_15 = arith.constant dense<0.000000e+00> : vector<128xf32>
    %39 = vector.multi_reduction <add>, %38, %cst_15 [1] : vector<128x128xf32> to vector<128xf32>
    %40 = vector.shape_cast %39 : vector<128xf32> to vector<128x1xf32>
    %41 = arith.addf %34, %40 : vector<128x1xf32>
    %42 = arith.index_cast %1 : i32 to index
    %c0_16 = arith.constant 0 : index
    %43 = vector.load %arg9[%42, %c0_16] : memref<128x1xf32, #tpu.memory_space<vmem>>, vector<128x1xf32>
    tpu.vector_store %arg9[%42, %c0_16], %41 {strides = array<i32>} : memref<128x1xf32, #tpu.memory_space<vmem>>, vector<128x1xf32>,
    %c0_i32_17 = arith.constant 0 : i32
    %44 = arith.cmpi eq, %arg0, %c0_i32_17 : i32
    %45 = arith.extui %44 : i1 to i32
    %c0_i32_18 = arith.constant 0 : i32
    %46 = arith.cmpi ne, %45, %c0_i32_18 : i32
    scf.if %46 {
      %47 = arith.index_cast %1 : i32 to index
      %c0_19 = arith.constant 0 : index
      %48 = vector.load %arg7[%47, %c0_19] : memref<128x1xf32, #tpu.memory_space<vmem>>, vector<128x1xf32>
      %49 = arith.index_cast %1 : i32 to index
      %c0_20 = arith.constant 0 : index
      %50 = vector.load %arg8[%49, %c0_20] : memref<128x1xf32, #tpu.memory_space<vmem>>, vector<128x1xf32>
      %51 = math.log %50 : vector<128x1xf32>
      %52 = arith.addf %48, %51 : vector<128x1xf32>
      %53 = arith.index_cast %1 : i32 to index
      %c0_21 = arith.constant 0 : index
      %54 = vector.load %arg9[%53, %c0_21] : memref<128x1xf32, #tpu.memory_space<vmem>>, vector<128x1xf32>
      %55 = arith.subf %52, %54 : vector<128x1xf32>
      %c0_22 = arith.constant 0 : index
      %c0_23 = arith.constant 0 : index
      %56 = vector.load %arg5[%c0_22, %c0_23] : memref<128x1xf32, #tpu.memory_space<vmem>>, vector<128x1xf32>
      %57 = arith.mulf %55, %56 : vector<128x1xf32>
      %c0_24 = arith.constant 0 : index
      %c0_25 = arith.constant 0 : index
      %58 = vector.load %arg6[%c0_24, %c0_25] : memref<128x1xf32, #tpu.memory_space<vmem>>, vector<128x1xf32>
      tpu.vector_store %arg6[%c0_24, %c0_25], %57 {strides = array<i32>} : memref<128x1xf32, #tpu.memory_space<vmem>>, vector<128x1xf32>,
    } else {
    }
    return
  }
  func.func @transform_0(%arg0: i32, %arg1: i32) -> (i32, i32) {
    %c0_i32 = arith.constant 0 : i32
    %c0_i32_0 = arith.constant 0 : i32
    return %arg1, %c0_i32 : i32, i32
  }
  func.func @transform_1(%arg0: i32, %arg1: i32) -> (i32, i32) {
    %c0_i32 = arith.constant 0 : i32
    %c0_i32_0 = arith.constant 0 : i32
    return %c0_i32, %arg0 : i32, i32
  }
  func.func @transform_2(%arg0: i32, %arg1: i32) -> (i32, i32) {
    %c0_i32 = arith.constant 0 : i32
    %c0_i32_0 = arith.constant 0 : i32
    return %arg1, %c0_i32 : i32, i32
  }
  func.func @transform_3(%arg0: i32, %arg1: i32) -> (i32, i32) {
    %c0_i32 = arith.constant 0 : i32
    %c0_i32_0 = arith.constant 0 : i32
    return %arg1, %c0_i32 : i32, i32
  }
  func.func @transform_4(%arg0: i32, %arg1: i32) -> (i32, i32) {
    %c0_i32 = arith.constant 0 : i32
    %c0_i32_0 = arith.constant 0 : i32
    return %arg1, %c0_i32 : i32, i32
  }
}

</mosaic_0001>

<bundles_post_ra>
// kernel: tpu_custom_call.1
= control target key start
LH: loop header
LB: loop body
LE: loop exit
PB: predicated region body
PF: predicated region fallthrough
CT: control target
= control target key end

     0   :  { %v1151_v1 = vmov 0   ;;  %vm147_vm0 = vcmask 261120   ;;  %vm24_vm1 = vcmask 7168   ;;  %v1152_v15 = vmov -inf   ;;  %s1790_s1 = inlined_call_operand.vmem [shape: bf16[32,128], index: 1, kind: input, shape index: {}]   ;;  %s1791_s0 = inlined_call_operand.vmem [shape: bf16[128,32], index: 0, kind: input, shape index: {}]   ;;  %s1792_s2 = inlined_call_operand.vmem [shape: s32[128,1], index: 2, kind: input, shape index: {}]   ;;  %s1793_s3 = inlined_call_operand.vmem [shape: f32[128,1], index: 3, kind: input, shape index: {}]   ;;  %s1794_s4 = inlined_call_operand.vmem [shape: f32[128,1], index: 4, kind: output, shape index: {}]  }
   0x1   :  { %v1045_v0 = vld [vmem:[%s1790_s1] sm:$0xff]   ;;  %1044 = vset.pattern.permute.xlu1 %v1151_v1  ;;  %1043 = vset.pattern.permute.xlu0 %v1151_v1  ;;  %v1046_v2 = vld [vmem:[%s1790_s1 + $0x8] sm:$0xff]   ;;  %v1051_v7 = vld [vmem:[%s1791_s0 + $0x10] sm:$0xff]   ;;  %35 = vst.msk [vmem:[#allocation2 + $0x50] sm:$0xff] %vm24_vm1, %v1152_v15  ;;  %v269_v16 = vlaneseq  ;;  %v1153_v36 = vmov 0.0  }
   0x2   :  { %1016 = vmatprep.subr.bf16.mxu0 %v1045_v0  ;;  %1036 = vmatprep.subr.bf16.mxu1 %v1045_v0  ;;  %v1047_v3 = vld [vmem:[%s1791_s0] sm:$0xff]   ;;  %v1049_v5 = vld [vmem:[%s1791_s0 + $0x8] sm:$0xff]   ;;  %v1053_v8 = vld [vmem:[%s1791_s0 + $0x30] sm:$0xff]   ;;  %25 = vst.msk [vmem:[#allocation2] sm:$0xff] %vm24_vm1, %v1152_v15 }
   0x3   :  { %1017 = vmatpush3.bf16.msra.mxu0 %v1045_v0  ;;  %1038 = vmatpush3.bf16.msra.mxu1 %v1045_v0  ;;  %v1048_v4 = vld [vmem:[%s1791_s0 + $0x20] sm:$0xff]   ;;  %v1050_v6 = vld [vmem:[%s1791_s0 + $0x28] sm:$0xff]   ;;  %v628_v11 = vld [vmem:[%s1792_s2 + $0x10] sm:$0xff]  ;;  %26 = vst.msk [vmem:[#allocation2 + $0x8] sm:$0xff] %vm24_vm1, %v1152_v15  ;;  %v1245_v17 = vand.u32 127, %v269_v16 }
   0x4   :  { %1018 = vmatprep.subr.bf16.mxu0 %v1046_v2  ;;  %1037 = vmatprep.subr.bf16.mxu1 %v1046_v2  ;;  %v627_v9 = vld [vmem:[%s1792_s2 + $0x8] sm:$0xff]  ;;  %v626_v10 = vld [vmem:[%s1792_s2] sm:$0xff]  ;;  %v1052_v12 = vld [vmem:[%s1791_s0 + $0x18] sm:$0xff]   ;;  %27 = vst.msk [vmem:[#allocation2 + $0x10] sm:$0xff] %vm24_vm1, %v1152_v15 }
   0x5   :  { %1020 = vmatprep.mubr.msk.bf16.mxu0 %vm147_vm0, %v1047_v3  ;;  %1028 = vmatprep.mubr.msk.bf16.mxu1 %vm147_vm0, %v1048_v4  ;;  %v1054_v13 = vld [vmem:[%s1791_s0 + $0x38] sm:$0xff]   ;;  %v630_v14 = vld [vmem:[%s1792_s2 + $0x20] sm:$0xff]  ;;  %28 = vst.msk [vmem:[#allocation2 + $0x18] sm:$0xff] %vm24_vm1, %v1152_v15  ;;  %29 = vst.msk [vmem:[#allocation2 + $0x20] sm:$0xff] %vm24_vm1, %v1152_v15 }
   0x6   :  { %681 = vperm.xlu1 %1044, %v627_v9   ;;  %678 = vperm.xlu0 %1043, %v626_v10   ;;  %30 = vst.msk [vmem:[#allocation2 + $0x28] sm:$0xff] %vm24_vm1, %v1152_v15  ;;  %31 = vst.msk [vmem:[#allocation2 + $0x30] sm:$0xff] %vm24_vm1, %v1152_v15  ;;  %v636_v56 = vld [vmem:[%s1792_s2 + $0x50] sm:$0xff] }
   0x7   :  { %1019 = vmatpush3.bf16.msra.mxu0 %v1046_v2  ;;  %1039 = vmatpush3.bf16.msra.mxu1 %v1046_v2  ;;  %32 = vst.msk [vmem:[#allocation2 + $0x38] sm:$0xff] %vm24_vm1, %v1152_v15  ;;  %33 = vst.msk [vmem:[#allocation2 + $0x40] sm:$0xff] %vm24_vm1, %v1152_v15 }
   0x8   :  { %34 = vst.msk [vmem:[#allocation2 + $0x48] sm:$0xff] %vm24_vm1, %v1152_v15  ;;  %36 = vst.msk [vmem:[#allocation2 + $0x58] sm:$0xff] %vm24_vm1, %v1152_v15  ;;  %v1337_v40 = vld [vmem:[#allocation2 + $0x50] sm:$0xff] }
   0x9   :  { %37 = vst.msk [vmem:[#allocation2 + $0x60] sm:$0xff] %vm24_vm1, %v1152_v15  ;;  %38 = vst.msk [vmem:[#allocation2 + $0x68] sm:$0xff] %vm24_vm1, %v1152_v15  ;;  %v1347_v46 = vld [vmem:[#allocation2] sm:$0xff] }
   0xa   :  { %1021 = vmatmul.mubr.msk.bf16.vlgmr.msra.gmra.mrb[0].mxu0 %vm147_vm0, %v1049_v5  ;;  %1029 = vmatmul.mubr.msk.bf16.vlgmr.msra.gmra.mrb[0].mxu1 %vm147_vm0, %v1050_v6  ;;  %39 = vst.msk [vmem:[#allocation2 + $0x70] sm:$0xff] %vm24_vm1, %v1152_v15  ;;  %40 = vst.msk [vmem:[#allocation2 + $0x78] sm:$0xff] %vm24_vm1, %v1152_v15  ;;  %v1388_v63 = vld [vmem:[#allocation2 + $0x8] sm:$0xff] }
   0xb   :  { %1024 = vmatprep.mubr.msk.bf16.mxu0 %vm147_vm0, %v1051_v7  ;;  %1032 = vmatprep.mubr.msk.bf16.mxu1 %vm147_vm0, %v1053_v8  ;;  %59 = vst.msk [vmem:[#allocation4] sm:$0xff] %vm24_vm1, %v1153_v36  ;;  %42 = vst.msk [vmem:[#allocation3] sm:$0xff] %vm24_vm1, %v1153_v36  ;;  %v1339_v41 = vld [vmem:[#allocation2 + $0x10] sm:$0xff] }
   0xc   :  { %684 = vperm.xlu1 %1044, %v628_v11   ;;  %43 = vst.msk [vmem:[#allocation3 + $0x8] sm:$0xff] %vm24_vm1, %v1153_v36  ;;  %44 = vst.msk [vmem:[#allocation3 + $0x10] sm:$0xff] %vm24_vm1, %v1153_v36  ;;  %v1349_v47 = vld [vmem:[#allocation2 + $0x18] sm:$0xff] }
   0xd   :  { %45 = vst.msk [vmem:[#allocation3 + $0x18] sm:$0xff] %vm24_vm1, %v1153_v36  ;;  %46 = vst.msk [vmem:[#allocation3 + $0x20] sm:$0xff] %vm24_vm1, %v1153_v36  ;;  %v1406_v6 = vld [vmem:[#allocation2 + $0x30] sm:$0xff] }
   0xe   :  { %47 = vst.msk [vmem:[#allocation3 + $0x28] sm:$0xff] %vm24_vm1, %v1153_v36  ;;  %48 = vst.msk [vmem:[#allocation3 + $0x30] sm:$0xff] %vm24_vm1, %v1153_v36  ;;  %v1366_v54 = vld [vmem:[#allocation2 + $0x40] sm:$0xff]  ;;  %v1408_v7 = vld [vmem:[#allocation2 + $0x38] sm:$0xff] }
   0xf   :  { %49 = vst.msk [vmem:[#allocation3 + $0x38] sm:$0xff] %vm24_vm1, %v1153_v36  ;;  %50 = vst.msk [vmem:[#allocation3 + $0x40] sm:$0xff] %vm24_vm1, %v1153_v36  ;;  %v1368_v55 = vld [vmem:[#allocation2 + $0x58] sm:$0xff]  ;;  %v1386_v62 = vld [vmem:[#allocation2 + $0x48] sm:$0xff] }
  0x10   :  { %690 = vperm.xlu1 %1044, %v630_v14   ;;  %51 = vst.msk [vmem:[#allocation3 + $0x48] sm:$0xff] %vm24_vm1, %v1153_v36  ;;  %52 = vst.msk [vmem:[#allocation3 + $0x50] sm:$0xff] %vm24_vm1, %v1153_v36 }
  0x11   :  { %53 = vst.msk [vmem:[#allocation3 + $0x58] sm:$0xff] %vm24_vm1, %v1153_v36  ;;  %54 = vst.msk [vmem:[#allocation3 + $0x60] sm:$0xff] %vm24_vm1, %v1153_v36  ;;  %v1426_v14 = vld [vmem:[#allocation2 + $0x70] sm:$0xff]  ;;  %v1428_v15 = vld [vmem:[#allocation2 + $0x78] sm:$0xff] }
  0x12   :  { %1025 = vmatmul.mubr.msk.bf16.gmra.mrb[4].mxu0 %vm147_vm0, %v1052_v12  ;;  %1033 = vmatmul.mubr.msk.bf16.gmra.mrb[4].mxu1 %vm147_vm0, %v1054_v13  ;;  %55 = vst.msk [vmem:[#allocation3 + $0x68] sm:$0xff] %vm24_vm1, %v1153_v36  ;;  %56 = vst.msk [vmem:[#allocation3 + $0x70] sm:$0xff] %vm24_vm1, %v1153_v36 }
  0x13   :  { %57 = vst.msk [vmem:[#allocation3 + $0x78] sm:$0xff] %vm24_vm1, %v1153_v36  ;;  %60 = vst.msk [vmem:[#allocation4 + $0x8] sm:$0xff] %vm24_vm1, %v1153_v36 }
  0x14   :  { %61 = vst.msk [vmem:[#allocation4 + $0x10] sm:$0xff] %vm24_vm1, %v1153_v36  ;;  %62 = vst.msk [vmem:[#allocation4 + $0x18] sm:$0xff] %vm24_vm1, %v1153_v36 }
  0x15   :  { %63 = vst.msk [vmem:[#allocation4 + $0x20] sm:$0xff] %vm24_vm1, %v1153_v36  ;;  %64 = vst.msk [vmem:[#allocation4 + $0x28] sm:$0xff] %vm24_vm1, %v1153_v36 }
  0x16   :  { %65 = vst.msk [vmem:[#allocation4 + $0x30] sm:$0xff] %vm24_vm1, %v1153_v36  ;;  %66 = vst.msk [vmem:[#allocation4 + $0x38] sm:$0xff] %vm24_vm1, %v1153_v36 }
  0x17   :  { %67 = vst.msk [vmem:[#allocation4 + $0x40] sm:$0xff] %vm24_vm1, %v1153_v36  ;;  %68 = vst.msk [vmem:[#allocation4 + $0x48] sm:$0xff] %vm24_vm1, %v1153_v36 }
  0x18   :  { %69 = vst.msk [vmem:[#allocation4 + $0x50] sm:$0xff] %vm24_vm1, %v1153_v36  ;;  %70 = vst.msk [vmem:[#allocation4 + $0x58] sm:$0xff] %vm24_vm1, %v1153_v36 }
  0x19   :  { %71 = vst.msk [vmem:[#allocation4 + $0x60] sm:$0xff] %vm24_vm1, %v1153_v36  ;;  %72 = vst.msk [vmem:[#allocation4 + $0x68] sm:$0xff] %vm24_vm1, %v1153_v36 }
  0x1a   :  { %73 = vst.msk [vmem:[#allocation4 + $0x70] sm:$0xff] %vm24_vm1, %v1153_v36  ;;  %74 = vst.msk [vmem:[#allocation4 + $0x78] sm:$0xff] %vm24_vm1, %v1153_v36 }
  0x1b   :  { %1801 = vst [vmem:[#allocation5_spill] sm:$0xff] %v1408_v7  ;;  %1803 = vst [vmem:[#allocation7_spill] sm:$0xff] %v1428_v15 }
  0x85   :  { %v682_v18 = vpop.permute.xlu1 %681  ;;  %v1333_v38 = vpop.permute.xlu0 %678 }
  0x86   :  { %vm726_vm2 = vcmp.eq.s32.totalorder %v1245_v17, %v682_v18  ;;  %v1467_v18 = vld [vmem:[#allocation2 + $0x68] sm:$0xff]  ;;  %vm725_vm3 = vcmp.eq.s32.totalorder %v1245_v17, %v1333_v38  ;;  %v640_v38 = vld [vmem:[%s1792_s2 + $0x70] sm:$0xff] }
  0x87   :  { %1805 = vst [vmem:[#allocation9_spill] sm:$0xff] %v1467_v18 }
  0x8b   :  { %v1331_v37 = vpop.permute.xlu1 %684 }
  0x8c   :  { %vm727_vm4 = vcmp.eq.s32.totalorder %v1245_v17, %v1331_v37  ;;  %v631_v37 = vld [vmem:[%s1792_s2 + $0x28] sm:$0xff] }
  0x8f   :  { %v1335_v39 = vpop.permute.xlu1 %690 }
  0x90   :  { %vm729_vm5 = vcmp.eq.s32.totalorder %v1245_v17, %v1335_v39 }
  0xdd   :  { %v1247_v19 = vpop.f32.mrb[0].mxu0  ;;  %v1249_v20 = vpop.f32.mrb[0].mxu1 }
  0xde   :  { %308 = vmax.xlane.f32.xlu0 %v1249_v20  ;;  %292 = vmax.xlane.f32.xlu1 %v1247_v19  ;;  %v1254_v21 = vpop.f32.mrb[1].mxu0  ;;  %v1256_v22 = vpop.f32.mrb[1].mxu1 }
  0xdf   :  { %v1258_v23 = vpop.f32.mrb[2].mxu0  ;;  %v1260_v24 = vpop.f32.mrb[2].mxu1  ;;  %v741_v8 = vsel %vm725_vm3, %v1254_v21, 0.0 }
  0xe0   :  { %v1262_v25 = vpop.f32.mrb[3].mxu0  ;;  %v1264_v26 = vpop.f32.mrb[3].mxu1 }
  0xe1   :  { %v1267_v27 = vsel %vm726_vm2, %v1262_v25, 0.0 }
  0xe2   :  { %288 = vmax.xlane.f32.xlu0 %v1254_v21  ;;  %294 = vmax.xlane.f32.xlu1 %v1258_v23 }
  0xe5   :  { %v1271_v28 = vpop.f32.mrb[4].mxu0  ;;  %v1273_v29 = vpop.f32.mrb[4].mxu1 }
  0xe6   :  { %304 = vmax.xlane.f32.xlu0 %v1256_v22  ;;  %310 = vmax.xlane.f32.xlu1 %v1260_v24  ;;  %v1277_v30 = vpop.f32.mrb[5].mxu0  ;;  %v1279_v31 = vpop.f32.mrb[5].mxu1 }
  0xe7   :  { %v1281_v32 = vpop.f32.mrb[6].mxu0  ;;  %v1283_v33 = vpop.f32.mrb[6].mxu1 }
  0xe8   :  { %v1285_v34 = vpop.f32.mrb[7].mxu0  ;;  %v1287_v35 = vpop.f32.mrb[7].mxu1 }
  0xea   :  { %306 = vmax.xlane.f32.xlu1 %v1264_v26  ;;  %290 = vmax.xlane.f32.xlu0 %v1262_v25 }
  0xee   :  { %300 = vmax.xlane.f32.xlu0 %v1271_v28  ;;  %302 = vmax.xlane.f32.xlu1 %v1281_v32 }
  0xf2   :  { %316 = vmax.xlane.f32.xlu0 %v1273_v29  ;;  %318 = vmax.xlane.f32.xlu1 %v1283_v33 }
  0xf6   :  { %296 = vmax.xlane.f32.xlu0 %v1277_v30  ;;  %298 = vmax.xlane.f32.xlu1 %v1285_v34 }
  0xfa   :  { %312 = vmax.xlane.f32.xlu0 %v1279_v31  ;;  %314 = vmax.xlane.f32.xlu1 %v1287_v35 }
 0x16b   :  { %v309_v42 = vpop.xlane.xlu0 %308  ;;  %v293_v43 = vpop.xlane.xlu1 %292 }
 0x16c   :  { %v1342_v44 = vmax.f32 %v1337_v40, %v309_v42  ;;  %v1345_v45 = vmax.f32 %v1339_v41, %v293_v43 }
 0x16e   :  { %620 = vst.msk [vmem:[#allocation2 + $0x50] sm:$0xff] %vm24_vm1, %v1342_v44  ;;  %612 = vst.msk [vmem:[#allocation2 + $0x10] sm:$0xff] %vm24_vm1, %v1345_v45  ;;  %429 = vperm.xlu1 %1044, %v1345_v45  }
 0x16f   :  { %v289_v50 = vpop.xlane.xlu0 %288  ;;  %v295_v51 = vpop.xlane.xlu1 %294 }
 0x170   :  { %v1361_v52 = vmax.f32 %v1347_v46, %v289_v50  ;;  %v1364_v53 = vmax.f32 %v1349_v47, %v295_v51  ;;  %v1445_v51 = vld [vmem:[#allocation2 + $0x20] sm:$0xff] }
 0x172   :  { %610 = vst.msk [vmem:[#allocation2] sm:$0xff] %vm24_vm1, %v1361_v52  ;;  %613 = vst.msk [vmem:[#allocation2 + $0x18] sm:$0xff] %vm24_vm1, %v1364_v53  ;;  %419 = vperm.xlu0 %1043, %v1361_v52   ;;  %469 = vperm.xlu1 %1044, %v1342_v44  }
 0x173   :  { %v305_v58 = vpop.xlane.xlu0 %304  ;;  %v311_v59 = vpop.xlane.xlu1 %310 }
 0x174   :  { %v1381_v60 = vmax.f32 %v1366_v54, %v305_v58  ;;  %v1384_v61 = vmax.f32 %v1368_v55, %v311_v59  ;;  %v1447_v58 = vld [vmem:[#allocation2 + $0x28] sm:$0xff] }
 0x176   :  { %618 = vst.msk [vmem:[#allocation2 + $0x40] sm:$0xff] %vm24_vm1, %v1381_v60  ;;  %621 = vst.msk [vmem:[#allocation2 + $0x58] sm:$0xff] %vm24_vm1, %v1384_v61  ;;  %474 = vperm.xlu0 %1043, %v1384_v61   ;;  %459 = vperm.xlu1 %1044, %v1381_v60  }
 0x177   :  { %v307_v2 = vpop.xlane.xlu1 %306  ;;  %v291_v3 = vpop.xlane.xlu0 %290 }
 0x178   :  { %v1401_v4 = vmax.f32 %v1386_v62, %v307_v2  ;;  %v1404_v5 = vmax.f32 %v1388_v63, %v291_v3  ;;  %v743_v2 = vsel %vm727_vm4, %v1247_v19, 0.0 }
 0x17a   :  { %619 = vst.msk [vmem:[#allocation2 + $0x48] sm:$0xff] %vm24_vm1, %v1401_v4  ;;  %611 = vst.msk [vmem:[#allocation2 + $0x8] sm:$0xff] %vm24_vm1, %v1404_v5  ;;  %464 = vperm.xlu0 %1043, %v1401_v4   ;;  %434 = vperm.xlu1 %1044, %v1364_v53  }
 0x17b   :  { %v301_v10 = vpop.xlane.xlu0 %300  ;;  %v303_v11 = vpop.xlane.xlu1 %302 }
 0x17c   :  { %v1421_v12 = vmax.f32 %v1406_v6, %v301_v10  ;;  %v1424_v13 = vmax.f32 %v1408_v7, %v303_v11 }
 0x17e   :  { %1802 = vst [vmem:[#allocation6_spill] sm:$0xff] %v1424_v13  ;;  %616 = vst.msk [vmem:[#allocation2 + $0x30] sm:$0xff] %vm24_vm1, %v1421_v12  ;;  %424 = vperm.xlu1 %1044, %v1404_v5  }
 0x17f   :  { %617 = vst.msk [vmem:[#allocation2 + $0x38] sm:$0xff] %vm24_vm1, %v1424_v13  ;;  %v317_v36 = vpop.xlane.xlu0 %316  ;;  %v319_v42 = vpop.xlane.xlu1 %318 }
 0x180   :  { %v1440_v43 = vmax.f32 %v1426_v14, %v317_v36  ;;  %v1443_v50 = vmax.f32 %v1428_v15, %v319_v42  ;;  %v1465_v42 = vld [vmem:[#allocation2 + $0x60] sm:$0xff] }
 0x182   :  { %1804 = vst [vmem:[#allocation8_spill] sm:$0xff] %v1443_v50  ;;  %624 = vst.msk [vmem:[#allocation2 + $0x70] sm:$0xff] %vm24_vm1, %v1440_v43  ;;  %494 = vperm.xlu0 %1043, %v1443_v50   ;;  %449 = vperm.xlu1 %1044, %v1421_v12  }
 0x183   :  { %625 = vst.msk [vmem:[#allocation2 + $0x78] sm:$0xff] %vm24_vm1, %v1443_v50  ;;  %v297_v3 = vpop.xlane.xlu0 %296  ;;  %v299_v10 = vpop.xlane.xlu1 %298 }
 0x184   :  { %v1460_v11 = vmax.f32 %v1445_v51, %v297_v3  ;;  %v1463_v36 = vmax.f32 %v1447_v58, %v299_v10 }
 0x186   :  { %614 = vst.msk [vmem:[#allocation2 + $0x20] sm:$0xff] %vm24_vm1, %v1460_v11  ;;  %615 = vst.msk [vmem:[#allocation2 + $0x28] sm:$0xff] %vm24_vm1, %v1463_v36  ;;  %489 = vperm.xlu1 %1044, %v1440_v43  }
 0x187   :  { %v313_v3 = vpop.xlane.xlu0 %312  ;;  %v315_v10 = vpop.xlane.xlu1 %314 }
 0x188   :  { %v1479_v1 = vmax.f32 %v1465_v42, %v313_v3  ;;  %v1482_v57 = vmax.f32 %v1467_v18, %v315_v10  ;;  %v632_v3 = vld [vmem:[%s1792_s2 + $0x30] sm:$0xff]  ;;  %v634_v10 = vld [vmem:[%s1792_s2 + $0x40] sm:$0xff] }
 0x18a   :  { %1806 = vst [vmem:[#allocation10_spill] sm:$0xff] %v1482_v57  ;;  %622 = vst.msk [vmem:[#allocation2 + $0x60] sm:$0xff] %vm24_vm1, %v1479_v1  ;;  %439 = vperm.xlu1 %1044, %v1460_v11  }
 0x18b   :  { %623 = vst.msk [vmem:[#allocation2 + $0x68] sm:$0xff] %vm24_vm1, %v1482_v57 }
 0x18e   :  { %479 = vperm.xlu1 %1044, %v1479_v1  }
 0x192   :  { %454 = vperm.xlu1 %1044, %v1424_v13  }
 0x196   :  { %444 = vperm.xlu1 %1044, %v1463_v36  }
 0x19a   :  { %696 = vperm.xlu1 %1044, %v632_v3   ;;  %v638_v3 = vld [vmem:[%s1792_s2 + $0x60] sm:$0xff] }
 0x19e   :  { %702 = vperm.xlu1 %1044, %v634_v10   ;;  %v629_v10 = vld [vmem:[%s1792_s2 + $0x18] sm:$0xff] }
 0x1a1   :  { %757 = vadd.xlane.f32.xlu0 %v741_v8  ;;  %v635_v8 = vld [vmem:[%s1792_s2 + $0x48] sm:$0xff] }
 0x1a2   :  { %708 = vperm.xlu1 %1044, %v636_v56   ;;  %v633_v56 = vld [vmem:[%s1792_s2 + $0x38] sm:$0xff] }
 0x1a5   :  { %761 = vadd.xlane.f32.xlu0 %v743_v2  ;;  %v637_v2 = vld [vmem:[%s1792_s2 + $0x58] sm:$0xff] }
 0x1a6   :  { %714 = vperm.xlu1 %1044, %v638_v3   ;;  %v639_v3 = vld [vmem:[%s1792_s2 + $0x68] sm:$0xff] }
 0x1aa   :  { %720 = vperm.xlu1 %1044, %v640_v38   ;;  %v641_v38 = vld [vmem:[%s1792_s2 + $0x78] sm:$0xff] }
 0x1bb   :  { %687 = vperm.xlu0 %1043, %v629_v10  }
 0x1bf   :  { %693 = vperm.xlu0 %1043, %v631_v37  }
 0x1c3   :  { %699 = vperm.xlu0 %1043, %v633_v56  }
 0x1c7   :  { %705 = vperm.xlu0 %1043, %v635_v8   ;;  %v745_v8 = vsel %vm729_vm5, %v1277_v30, 0.0 }
 0x1cb   :  { %711 = vperm.xlu0 %1043, %v637_v2  }
 0x1ce   :  { %759 = vadd.xlane.f32.xlu1 %v1267_v27 }
 0x1cf   :  { %717 = vperm.xlu0 %1043, %v639_v3  }
 0x1d3   :  { %723 = vperm.xlu0 %1043, %v641_v38  }
 0x1d7   :  { %484 = vperm.xlu0 %1043, %v1482_v57  }
 0x1ed   :  { %v430_v10 = vpop.permute.xlu1 %429 }
 0x1ee   :  { %v499_v0 = vsub.f32 %v1247_v19, %v430_v10 }
 0x1f0   :  { %v517_v48 = vmul.f32 1.442695, %v499_v0 }
 0x1f1   :  { %v470_v37 = vpop.permute.xlu1 %469  ;;  %v420_v7 = vpop.permute.xlu0 %419 }
 0x1f2   :  { %v507_v49 = vsub.f32 %v1249_v20, %v470_v37  ;;  %1055 = vpow2.f32 %v517_v48 }
 0x1f4   :  { %v533_v18 = vmul.f32 1.442695, %v507_v49 }
 0x1f5   :  { %v460_v56 = vpop.permute.xlu1 %459  ;;  %v475_v49 = vpop.permute.xlu0 %474 }
 0x1f6   :  { %765 = vadd.xlane.f32.xlu0 %v745_v8  ;;  %v505_v27 = vsub.f32 %v1256_v22, %v460_v56  ;;  %1057 = vpow2.f32 %v533_v18 }
 0x1f8   :  { %v529_v50 = vmul.f32 1.442695, %v505_v27 }
 0x1f9   :  { %v1541_v2 = vpop.permute.xlu1 %434  ;;  %v465_v27 = vpop.permute.xlu0 %464 }
 0x1fa   :  { %1059 = vpow2.f32 %v529_v50 }
 0x1fc   :  { %v1056_v48 = vpop.eup %1055 }
 0x1fd   :  { %v425_v3 = vpop.permute.xlu1 %424 }
 0x1fe   :  { %v498_v15 = vsub.f32 %v1262_v25, %v425_v3 }
 0x200   :  { %v515_v0 = vmul.f32 1.442695, %v498_v15  ;;  %v1058_v56 = vpop.eup %1057 }
 0x201   :  { %v450_v59 = vpop.permute.xlu1 %449  ;;  %v1561_v50 = vpop.permute.xlu0 %494 }
 0x202   :  { %v503_v10 = vsub.f32 %v1271_v28, %v450_v59  ;;  %1061 = vpow2.f32 %v515_v0 }
 0x204   :  { %v525_v37 = vmul.f32 1.442695, %v503_v10  ;;  %v1060_v3 = vpop.eup %1059 }
 0x205   :  { %v490_v16 = vpop.permute.xlu1 %489 }
 0x206   :  { %v511_v18 = vsub.f32 %v1273_v29, %v490_v16  ;;  %1063 = vpow2.f32 %v525_v37  ;;  %v663_v37 = vld [vmem:[#allocation4 + $0x10] sm:$0xff] }
 0x208   :  { %v541_v25 = vmul.f32 1.442695, %v511_v18 }
 0x209   :  { %v1545_v38 = vpop.permute.xlu1 %439 }
 0x20a   :  { %v501_v9 = vsub.f32 %v1277_v30, %v1545_v38  ;;  %1065 = vpow2.f32 %v541_v25 }
 0x20c   :  { %v1062_v59 = vpop.eup %1061 }
 0x20d   :  { %v480_v39 = vpop.permute.xlu1 %479 }
 0x210   :  { %v1064_v10 = vpop.eup %1063 }
 0x211   :  { %v1551_v8 = vpop.permute.xlu1 %454 }
 0x214   :  { %v1066_v18 = vpop.eup %1065 }
 0x215   :  { %v445_v57 = vpop.permute.xlu1 %444 }
 0x219   :  { %v697_v13 = vpop.permute.xlu1 %696 }
 0x21a   :  { %vm731_vm6 = vcmp.eq.s32.totalorder %v1245_v17, %v697_v13  ;;  %v509_v13 = vsub.f32 %v1279_v31, %v480_v39 }
 0x21b   :  { %v747_v19 = vsel %vm731_vm6, %v1271_v28, 0.0  ;;  %v502_v28 = vsub.f32 %v1285_v34, %v445_v57  ;;  %v497_v57 = vsub.f32 %v1254_v21, %v420_v7  ;;  %v1807_v21 = vsub.f32 %v1258_v23, %v1541_v2 }
 0x21c   :  { %769 = vadd.xlane.f32.xlu0 %v747_v19  ;;  %v537_v15 = vmul.f32 1.442695, %v509_v13  ;;  %v661_v19 = vld [vmem:[#allocation4] sm:$0xff] }
 0x21d   :  { %v523_v16 = vmul.f32 1.442695, %v502_v28  ;;  %v519_v7 = vmul.f32 1.442695, %v1807_v21  ;;  %v662_v21 = vld [vmem:[#allocation4 + $0x8] sm:$0xff] }
 0x21e   :  { %1067 = vpow2.f32 %v537_v15  ;;  %v513_v15 = vmul.f32 1.442695, %v497_v57 }
 0x21f   :  { %1069 = vpow2.f32 %v523_v16  ;;  %v508_v16 = vsub.f32 %v1260_v24, %v475_v49 }
 0x220   :  { %549 = vadd.xlane.f32.xlu0 %v1056_v48  ;;  %1071 = vpow2.f32 %v513_v15 }
 0x221   :  { %1073 = vpow2.f32 %v519_v7 }
 0x224   :  { %565 = vadd.xlane.f32.xlu0 %v1058_v56  ;;  %v703_v56 = vpop.permute.xlu1 %702 }
 0x225   :  { %vm733_vm8 = vcmp.eq.s32.totalorder %v1245_v17, %v703_v56 }
 0x228   :  { %561 = vadd.xlane.f32.xlu0 %v1060_v3  ;;  %v1068_v13 = vpop.eup %1067  ;;  %v709_v3 = vpop.permute.xlu1 %708 }
 0x229   :  { %vm735_vm10 = vcmp.eq.s32.totalorder %v1245_v17, %v709_v3 }
 0x22c   :  { %547 = vadd.xlane.f32.xlu0 %v1062_v59  ;;  %v1070_v59 = vpop.eup %1069 }
 0x22d   :  { %v1072_v57 = vpop.eup %1071 }
 0x22e   :  { %v758_v0 = vpop.xlane.xlu0 %757  ;;  %v1074_v15 = vpop.eup %1073 }
 0x22f   :  { %v789_v48 = vadd.f32 %v758_v0, %v661_v19 }
 0x230   :  { %557 = vadd.xlane.f32.xlu0 %v1064_v10  ;;  %v715_v10 = vpop.permute.xlu1 %714 }
 0x231   :  { %805 = vst.msk [vmem:[#allocation4] sm:$0xff] %vm24_vm1, %v789_v48  ;;  %v749_v48 = vsel %vm733_vm8, %v1256_v22, 0.0  ;;  %vm737_vm12 = vcmp.eq.s32.totalorder %v1245_v17, %v715_v10 }
 0x232   :  { %v762_v39 = vpop.xlane.xlu0 %761 }
 0x233   :  { %v791_v25 = vadd.f32 %v762_v39, %v663_v37  ;;  %v535_v39 = vmul.f32 1.442695, %v508_v16 }
 0x234   :  { %573 = vadd.xlane.f32.xlu0 %v1066_v18  ;;  %v506_v18 = vsub.f32 %v1264_v26, %v465_v27  ;;  %v721_v2 = vpop.permute.xlu1 %720  ;;  %v504_v27 = vsub.f32 %v1281_v32, %v1551_v8 }
 0x235   :  { %807 = vst.msk [vmem:[#allocation4 + $0x10] sm:$0xff] %vm24_vm1, %v791_v25  ;;  %1075 = vpow2.f32 %v535_v39  ;;  %v753_v25 = vsel %vm737_vm12, %v1279_v31, 0.0  ;;  %vm739_vm13 = vcmp.eq.s32.totalorder %v1245_v17, %v721_v2  ;;  %v512_v31 = vsub.f32 %v1283_v33, %v1561_v50 }
 0x236   :  { %v531_v56 = vmul.f32 1.442695, %v506_v18  ;;  %v755_v3 = vsel %vm739_vm13, %v1273_v29, 0.0 }
 0x237   :  { %v543_v16 = vmul.f32 1.442695, %v512_v31 }
 0x238   :  { %569 = vadd.xlane.f32.xlu0 %v1068_v13  ;;  %1077 = vpow2.f32 %v531_v56  ;;  %v1809_v56 = vsub.f32 %v1337_v40, %v1342_v44  ;;  %v1812_v40 = vsub.f32 %v1406_v6, %v1421_v12  ;;  %v1814_v12 = vsub.f32 %v1465_v42, %v1479_v1  ;;  %v343_v42 = vld [vmem:[#allocation3 + $0x30] sm:$0xff] }
 0x23a   :  { %v688_v28 = vpop.permute.xlu0 %687  ;;  %v381_v44 = vmul.f32 1.442695, %v1812_v40 }
 0x23b   :  { %vm728_vm7 = vcmp.eq.s32.totalorder %v1245_v17, %v688_v28  ;;  %v527_v28 = vmul.f32 1.442695, %v504_v27 }
 0x23c   :  { %555 = vadd.xlane.f32.xlu0 %v1070_v59  ;;  %v744_v19 = vsel %vm728_vm7, %v1258_v23, 0.0  ;;  %v751_v23 = vsel %vm735_vm10, %v1249_v20, 0.0  ;;  %v521_v20 = vmul.f32 1.442695, %v501_v9 }
 0x23d   :  { %763 = vadd.xlane.f32.xlu1 %v744_v19 }
 0x23e   :  { %v694_v0 = vpop.permute.xlu0 %693  ;;  %1079 = vpow2.f32 %v521_v20 }
 0x23f   :  { %vm730_vm9 = vcmp.eq.s32.totalorder %v1245_v17, %v694_v0  ;;  %v1076_v19 = vpop.eup %1075  ;;  %1081 = vpow2.f32 %v527_v28 }
 0x240   :  { %773 = vadd.xlane.f32.xlu0 %v749_v48  ;;  %v746_v37 = vsel %vm730_vm9, %v1285_v34, 0.0  ;;  %1083 = vpow2.f32 %v543_v16  ;;  %v393_v16 = vmul.f32 1.442695, %v1814_v12 }
 0x241   :  { %767 = vadd.xlane.f32.xlu1 %v746_v37 }
 0x242   :  { %v700_v49 = vpop.permute.xlu0 %699  ;;  %v1078_v9 = vpop.eup %1077 }
 0x243   :  { %vm732_vm11 = vcmp.eq.s32.totalorder %v1245_v17, %v700_v49 }
 0x244   :  { %777 = vadd.xlane.f32.xlu0 %v751_v23  ;;  %v748_v22 = vsel %vm732_vm11, %v1281_v32, 0.0  ;;  %v665_v23 = vld [vmem:[#allocation4 + $0x20] sm:$0xff] }
 0x245   :  { %771 = vadd.xlane.f32.xlu1 %v748_v22 }
 0x246   :  { %v706_v34 = vpop.permute.xlu0 %705 }
 0x247   :  { %vm734_vm14 = vcmp.eq.s32.totalorder %v1245_v17, %v706_v34  ;;  %v389_v34 = vmul.f32 1.442695, %v1809_v56 }
 0x248   :  { %781 = vadd.xlane.f32.xlu0 %v753_v25  ;;  %v1080_v38 = vpop.eup %1079  ;;  %v750_v37 = vsel %vm734_vm14, %v1264_v26, 0.0  ;;  %v1808_v26 = vsub.f32 %v1339_v41, %v1345_v45  ;;  %v339_v41 = vld [vmem:[#allocation3 + $0x10] sm:$0xff] }
 0x249   :  { %545 = vadd.xlane.f32.xlu1 %v1072_v57  ;;  %v1082_v7 = vpop.eup %1081  ;;  %v667_v57 = vld [vmem:[#allocation4 + $0x30] sm:$0xff] }
 0x24a   :  { %v712_v13 = vpop.permute.xlu0 %711  ;;  %v1084_v10 = vpop.eup %1083 }
 0x24b   :  { %vm736_vm15 = vcmp.eq.s32.totalorder %v1245_v17, %v712_v13 }
 0x24c   :  { %785 = vadd.xlane.f32.xlu0 %v755_v3  ;;  %v752_v39 = vsel %vm736_vm15, %v1260_v24, 0.0  ;;  %v373_v24 = vmul.f32 1.442695, %v1808_v26  ;;  %v347_v3 = vld [vmem:[#allocation3 + $0x50] sm:$0xff]  ;;  %v1816_v26 = vsub.f32 %v1347_v46, %v1361_v52 }
 0x24d   :  { %551 = vadd.xlane.f32.xlu1 %v1074_v15 }
 0x24e   :  { %v718_v59 = vpop.permute.xlu0 %717 }
 0x24f   :  { %vm738_vm0 = vcmp.eq.s32.totalorder %v1245_v17, %v718_v59 }
 0x250   :  { %v754_v18 = vsel %vm738_vm0, %v1287_v35, 0.0 }
 0x251   :  { %567 = vadd.xlane.f32.xlu1 %v1076_v19  ;;  %v345_v19 = vld [vmem:[#allocation3 + $0x40] sm:$0xff] }
 0x252   :  { %v724_v30 = vpop.permute.xlu0 %723 }
 0x253   :  { %vm740_vm2 = vcmp.eq.s32.totalorder %v1245_v17, %v724_v30  ;;  %v1810_v17 = vsub.f32 %v1366_v54, %v1381_v60 }
 0x254   :  { %v756_v49 = vsel %vm740_vm2, %v1283_v33, 0.0 }
 0x255   :  { %563 = vadd.xlane.f32.xlu1 %v1078_v9  ;;  %v385_v33 = vmul.f32 1.442695, %v1810_v17  ;;  %v826_v17 = vld [vmem:[#allocation2 + $0x10] sm:$0xff] }
 0x256   :  { %v485_v32 = vpop.permute.xlu0 %484 }
 0x257   :  { %v510_v29 = vsub.f32 %v1287_v35, %v485_v32  ;;  %v1811_v35 = vsub.f32 %v1388_v63, %v1404_v5  ;;  %v1813_v63 = vsub.f32 %v1426_v14, %v1440_v43  ;;  %v1815_v43 = vsub.f32 %v1447_v58, %v1463_v36 }
 0x259   :  { %v539_v8 = vmul.f32 1.442695, %v510_v29  ;;  %553 = vadd.xlane.f32.xlu1 %v1080_v38  ;;  %v371_v25 = vmul.f32 1.442695, %v1811_v35  ;;  %v397_v5 = vmul.f32 1.442695, %v1813_v63 }
 0x25a   :  { %v338_v29 = vld [vmem:[#allocation3 + $0x8] sm:$0xff]  ;;  %v379_v38 = vmul.f32 1.442695, %v1815_v43  ;;  %v671_v43 = vld [vmem:[#allocation4 + $0x50] sm:$0xff] }
 0x25b   :  { %1085 = vpow2.f32 %v539_v8  ;;  %v760_v50 = vpop.xlane.xlu1 %759 }
 0x25c   :  { %v790_v0 = vadd.f32 %v760_v50, %v662_v21  ;;  %1087 = vpow2.f32 %v373_v24  ;;  %v369_v24 = vmul.f32 1.442695, %v1816_v26  ;;  %v832_v26 = vld [vmem:[#allocation2 + $0x40] sm:$0xff] }
 0x25d   :  { %559 = vadd.xlane.f32.xlu1 %v1082_v7  ;;  %1089 = vpow2.f32 %v389_v34 }
 0x25e   :  { %806 = vst.msk [vmem:[#allocation4 + $0x8] sm:$0xff] %vm24_vm1, %v790_v0  ;;  %1091 = vpow2.f32 %v385_v33 }
 0x25f   :  { %1093 = vpow2.f32 %v371_v25 }
 0x260   :  { %1095 = vpow2.f32 %v381_v44  ;;  %v1817_v44 = vsub.f32 %v1349_v47, %v1364_v53  ;;  %v669_v53 = vld [vmem:[#allocation4 + $0x40] sm:$0xff] }
 0x261   :  { %575 = vadd.xlane.f32.xlu1 %v1084_v10  ;;  %1097 = vpow2.f32 %v397_v5 }
 0x262   :  { %1099 = vpow2.f32 %v393_v16 }
 0x265   :  { %v1086_v48 = vpop.eup %1085 }
 0x266   :  { %571 = vadd.xlane.f32.xlu1 %v1086_v48  ;;  %v1088_v20 = vpop.eup %1087 }
 0x267   :  { %v403_v13 = vmul.f32 %v1088_v20, %v339_v41  ;;  %v1090_v54 = vpop.eup %1089  ;;  %v342_v20 = vld [vmem:[#allocation3 + $0x28] sm:$0xff]  ;;  %v938_v41 = vld [vmem:[%s1793_s3 + $0x10] sm:$0xff] }
 0x268   :  { %v411_v31 = vmul.f32 %v1090_v54, %v347_v3  ;;  %v1092_v28 = vpop.eup %1091 }
 0x269   :  { %v409_v30 = vmul.f32 %v1092_v28, %v345_v19  ;;  %v1094_v9 = vpop.eup %1093 }
 0x26a   :  { %775 = vadd.xlane.f32.xlu1 %v750_v37  ;;  %v402_v21 = vmul.f32 %v1094_v9, %v338_v29  ;;  %v1096_v50 = vpop.eup %1095  ;;  %v351_v37 = vld [vmem:[#allocation3 + $0x70] sm:$0xff] }
 0x26b   :  { %v407_v0 = vmul.f32 %v1096_v50, %v343_v42  ;;  %v1098_v10 = vpop.eup %1097 }
 0x26c   :  { %v415_v58 = vmul.f32 %v1098_v10, %v351_v37  ;;  %v1100_v36 = vpop.eup %1099 }
 0x26e   :  { %779 = vadd.xlane.f32.xlu1 %v752_v39 }
 0x272   :  { %783 = vadd.xlane.f32.xlu1 %v754_v18 }
 0x276   :  { %787 = vadd.xlane.f32.xlu1 %v756_v49  ;;  %v349_v49 = vld [vmem:[#allocation3 + $0x60] sm:$0xff] }
 0x277   :  { %v413_v33 = vmul.f32 %v1100_v36, %v349_v49  ;;  %v673_v49 = vld [vmem:[#allocation4 + $0x60] sm:$0xff] }
 0x283   :  { %v766_v22 = vpop.xlane.xlu0 %765 }
 0x284   :  { %v793_v2 = vadd.f32 %v766_v22, %v665_v23 }
 0x286   :  { %809 = vst.msk [vmem:[#allocation4 + $0x20] sm:$0xff] %vm24_vm1, %v793_v2 }
 0x2a9   :  { %v770_v27 = vpop.xlane.xlu0 %769 }
 0x2aa   :  { %v795_v45 = vadd.f32 %v770_v27, %v667_v57  ;;  %v906_v27 = vld [vmem:[#allocation4 + $0x10] sm:$0xff] }
 0x2ac   :  { %811 = vst.msk [vmem:[#allocation4 + $0x30] sm:$0xff] %vm24_vm1, %v795_v45 }
 0x2ad   :  { %v550_v60 = vpop.xlane.xlu0 %549 }
 0x2ae   :  { %v579_v15 = vadd.f32 %v550_v60, %v403_v13  ;;  %v375_v13 = vmul.f32 1.442695, %v1817_v44  ;;  %v664_v60 = vld [vmem:[#allocation4 + $0x18] sm:$0xff]  ;;  %v1821_v44 = vld [vmem:[#allocation5_spill] sm:$0xff] }
 0x2b0   :  { %596 = vst.msk [vmem:[#allocation3 + $0x10] sm:$0xff] %vm24_vm1, %v579_v15 }
 0x2b1   :  { %v566_v59 = vpop.xlane.xlu0 %565 }
 0x2b2   :  { %v587_v6 = vadd.f32 %v566_v59, %v411_v31  ;;  %v1818_v31 = vsub.f32 %v1368_v55, %v1384_v61  ;;  %v666_v59 = vld [vmem:[#allocation4 + $0x28] sm:$0xff]  ;;  %v1819_v61 = vsub.f32 %v1386_v62, %v1401_v4 }
 0x2b3   :  { %v937_v62 = vld [vmem:[%s1793_s3 + $0x8] sm:$0xff] }
 0x2b4   :  { %604 = vst.msk [vmem:[#allocation3 + $0x50] sm:$0xff] %vm24_vm1, %v587_v6  ;;  %v391_v28 = vmul.f32 1.442695, %v1818_v31  ;;  %v387_v9 = vmul.f32 1.442695, %v1819_v61 }
 0x2b5   :  { %v562_v32 = vpop.xlane.xlu0 %561 }
 0x2b6   :  { %v585_v14 = vadd.f32 %v562_v32, %v409_v30 }
 0x2b7   :  { %v842_v8 = vld [vmem:[#allocation3 + $0x10] sm:$0xff] }
 0x2b8   :  { %1101 = vlog2.f32 %v842_v8  ;;  %602 = vst.msk [vmem:[#allocation3 + $0x40] sm:$0xff] %vm24_vm1, %v585_v14  ;;  %v668_v8 = vld [vmem:[#allocation4 + $0x38] sm:$0xff] }
 0x2b9   :  { %v548_v1 = vpop.xlane.xlu0 %547  ;;  %1103 = vpow2.f32 %v379_v38  ;;  %v825_v38 = vld [vmem:[#allocation2 + $0x8] sm:$0xff] }
 0x2ba   :  { %v578_v7 = vadd.f32 %v548_v1, %v402_v21 }
 0x2bb   :  { %v850_v45 = vld [vmem:[#allocation3 + $0x50] sm:$0xff] }
 0x2bc   :  { %595 = vst.msk [vmem:[#allocation3 + $0x8] sm:$0xff] %vm24_vm1, %v578_v7  ;;  %v905_v7 = vld [vmem:[#allocation4 + $0x8] sm:$0xff] }
 0x2bd   :  { %v558_v48 = vpop.xlane.xlu0 %557 }
 0x2be   :  { %v583_v39 = vadd.f32 %v558_v48, %v407_v0  ;;  %v337_v48 = vld [vmem:[#allocation3] sm:$0xff] }
 0x2bf   :  { %v848_v22 = vld [vmem:[#allocation3 + $0x40] sm:$0xff] }
 0x2c0   :  { %600 = vst.msk [vmem:[#allocation3 + $0x30] sm:$0xff] %vm24_vm1, %v583_v39 }
 0x2c1   :  { %v574_v18 = vpop.xlane.xlu0 %573 }
 0x2c2   :  { %v1102_v23 = vpop.eup %1101  ;;  %v591_v2 = vadd.f32 %v574_v18, %v415_v58 }
 0x2c3   :  { %v861_v56 = vmul.f32 0.6931472, %v1102_v23  ;;  %v841_v34 = vld [vmem:[#allocation3 + $0x8] sm:$0xff]  ;;  %v1104_v35 = vpop.eup %1103  ;;  %v830_v23 = vld [vmem:[#allocation2 + $0x30] sm:$0xff] }
 0x2c4   :  { %1105 = vlog2.f32 %v841_v34  ;;  %608 = vst.msk [vmem:[#allocation3 + $0x70] sm:$0xff] %vm24_vm1, %v591_v2  ;;  %v406_v54 = vmul.f32 %v1104_v35, %v342_v20  ;;  %v910_v35 = vld [vmem:[#allocation4 + $0x30] sm:$0xff] }
 0x2c5   :  { %v890_v25 = vadd.f32 %v861_v56, %v826_v17  ;;  %1107 = vlog2.f32 %v848_v22  ;;  %v570_v57 = vpop.xlane.xlu0 %569  ;;  %v1820_v22 = vsub.f32 %v1445_v51, %v1460_v11 }
 0x2c6   :  { %v589_v46 = vadd.f32 %v570_v57, %v413_v33  ;;  %1109 = vpow2.f32 %v369_v24 }
 0x2c7   :  { %v922_v52 = vsub.f32 %v890_v25, %v906_v27  ;;  %v846_v40 = vld [vmem:[#allocation3 + $0x30] sm:$0xff]  ;;  %v377_v2 = vmul.f32 1.442695, %v1820_v22  ;;  %v340_v27 = vld [vmem:[#allocation3 + $0x18] sm:$0xff] }
 0x2c8   :  { %1111 = vlog2.f32 %v846_v40  ;;  %606 = vst.msk [vmem:[#allocation3 + $0x60] sm:$0xff] %vm24_vm1, %v589_v46  ;;  %v942_v25 = vld [vmem:[%s1793_s3 + $0x30] sm:$0xff] }
 0x2c9   :  { %v954_v3 = vmul.f32 %v938_v41, %v922_v52  ;;  %1113 = vlog2.f32 %v850_v45  ;;  %v556_v15 = vpop.xlane.xlu0 %555  ;;  %v944_v45 = vld [vmem:[%s1793_s3 + $0x40] sm:$0xff]  ;;  %v675_v40 = vld [vmem:[#allocation4 + $0x70] sm:$0xff] }
 0x2ca   :  { %v582_v63 = vadd.f32 %v556_v15, %v406_v54  ;;  %v764_v5 = vpop.xlane.xlu1 %763  ;;  %1115 = vpow2.f32 %v375_v13  ;;  %v1822_v13 = vld [vmem:[#allocation6_spill] sm:$0xff] }
 0x2cb   :  { %970 = vst.msk [vmem:[%s1794_s4 + $0x10] sm:$0xff] %vm24_vm1, %v954_v3  ;;  %v792_v47 = vadd.f32 %v764_v5, %v664_v60  ;;  %v854_v12 = vld [vmem:[#allocation3 + $0x70] sm:$0xff]  ;;  %1117 = vpow2.f32 %v391_v28  ;;  %v1823_v54 = vsub.f32 %v1821_v44, %v1822_v13 }
 0x2cc   :  { %599 = vst.msk [vmem:[#allocation3 + $0x28] sm:$0xff] %vm24_vm1, %v582_v63  ;;  %v834_v63 = vld [vmem:[#allocation2 + $0x50] sm:$0xff] }
 0x2cd   :  { %808 = vst.msk [vmem:[#allocation4 + $0x18] sm:$0xff] %vm24_vm1, %v792_v47  ;;  %v774_v19 = vpop.xlane.xlu0 %773  ;;  %v383_v60 = vmul.f32 1.442695, %v1823_v54 }
 0x2ce   :  { %v1106_v6 = vpop.eup %1105  ;;  %v797_v16 = vadd.f32 %v774_v19, %v669_v53  ;;  %v768_v30 = vpop.xlane.xlu1 %767 }
 0x2cf   :  { %v1108_v55 = vpop.eup %1107  ;;  %v859_v32 = vmul.f32 0.6931472, %v1106_v6  ;;  %v852_v29 = vld [vmem:[#allocation3 + $0x60] sm:$0xff]  ;;  %v794_v14 = vadd.f32 %v768_v30, %v666_v59  ;;  %v946_v30 = vld [vmem:[%s1793_s3 + $0x50] sm:$0xff] }
 0x2d0   :  { %1119 = vlog2.f32 %v852_v29  ;;  %813 = vst.msk [vmem:[#allocation4 + $0x40] sm:$0xff] %vm24_vm1, %v797_v16  ;;  %v1110_v21 = vpop.eup %1109  ;;  %v873_v4 = vmul.f32 0.6931472, %v1108_v55  ;;  %v1825_v29 = vld [vmem:[#allocation8_spill] sm:$0xff] }
 0x2d1   :  { %v889_v50 = vadd.f32 %v859_v32, %v825_v38  ;;  %1121 = vlog2.f32 %v854_v12  ;;  %810 = vst.msk [vmem:[#allocation4 + $0x28] sm:$0xff] %vm24_vm1, %v794_v14  ;;  %v778_v1 = vpop.xlane.xlu0 %777  ;;  %v401_v17 = vmul.f32 %v1110_v21, %v337_v48  ;;  %v348_v12 = vld [vmem:[#allocation3 + $0x58] sm:$0xff]  ;;  %v1824_v32 = vld [vmem:[#allocation7_spill] sm:$0xff]  ;;  %v836_v38 = vld [vmem:[#allocation2 + $0x60] sm:$0xff] }
 0x2d2   :  { %v1112_v42 = vpop.eup %1111  ;;  %v799_v0 = vadd.f32 %v778_v1, %v671_v43  ;;  %v772_v10 = vpop.xlane.xlu1 %771  ;;  %1123 = vpow2.f32 %v387_v9  ;;  %v896_v57 = vadd.f32 %v873_v4, %v832_v26  ;;  %v1826_v14 = vsub.f32 %v1824_v32, %v1825_v29  ;;  %v1828_v21 = vld [vmem:[#allocation9_spill] sm:$0xff]  ;;  %v838_v26 = vld [vmem:[#allocation2 + $0x70] sm:$0xff] }
 0x2d3   :  { %v1114_v37 = vpop.eup %1113  ;;  %v921_v39 = vsub.f32 %v889_v50, %v905_v7  ;;  %v869_v58 = vmul.f32 0.6931472, %v1112_v42  ;;  %v845_v36 = vld [vmem:[#allocation3 + $0x28] sm:$0xff]  ;;  %v796_v18 = vadd.f32 %v772_v10, %v668_v8  ;;  %v936_v32 = vld [vmem:[%s1793_s3] sm:$0xff] }
 0x2d4   :  { %1125 = vlog2.f32 %v845_v36  ;;  %815 = vst.msk [vmem:[#allocation4 + $0x50] sm:$0xff] %vm24_vm1, %v799_v0  ;;  %v1116_v33 = vpop.eup %1115  ;;  %v877_v20 = vmul.f32 0.6931472, %v1114_v37  ;;  %v399_v43 = vmul.f32 1.442695, %v1826_v14  ;;  %v1827_v8 = vld [vmem:[#allocation10_spill] sm:$0xff] }
 0x2d5   :  { %v953_v24 = vmul.f32 %v937_v62, %v921_v39  ;;  %v894_v56 = vadd.f32 %v869_v58, %v830_v23  ;;  %812 = vst.msk [vmem:[#allocation4 + $0x38] sm:$0xff] %vm24_vm1, %v796_v18  ;;  %v782_v34 = vpop.xlane.xlu0 %781  ;;  %1127 = vpow2.f32 %v377_v2  ;;  %v1118_v15 = vpop.eup %1117  ;;  %v404_v28 = vmul.f32 %v1116_v33, %v340_v27  ;;  %v346_v37 = vld [vmem:[#allocation3 + $0x48] sm:$0xff]  ;;  %v948_v58 = vld [vmem:[%s1793_s3 + $0x60] sm:$0xff] }
 0x2d6   :  { %v801_v51 = vadd.f32 %v782_v34, %v673_v49  ;;  %v546_v11 = vpop.xlane.xlu1 %545  ;;  %v898_v59 = vadd.f32 %v877_v20, %v834_v63  ;;  %1129 = vpow2.f32 %v383_v60  ;;  %v366_v50 = vsub.f32 %v1828_v21, %v1827_v8  ;;  %v829_v49 = vld [vmem:[#allocation2 + $0x28] sm:$0xff]  ;;  %v341_v20 = vld [vmem:[#allocation3 + $0x20] sm:$0xff]  ;;  %v344_v60 = vld [vmem:[#allocation3 + $0x38] sm:$0xff] }
 0x2d7   :  { %969 = vst.msk [vmem:[%s1794_s4 + $0x8] sm:$0xff] %vm24_vm1, %v953_v24  ;;  %v926_v41 = vsub.f32 %v894_v56, %v910_v35  ;;  %v912_v46 = vld [vmem:[#allocation4 + $0x40] sm:$0xff]  ;;  %v577_v52 = vadd.f32 %v546_v11, %v401_v17  ;;  %v412_v62 = vmul.f32 %v1118_v15, %v348_v12  ;;  %1131 = vpow2.f32 %v399_v43  ;;  %v941_v17 = vld [vmem:[%s1793_s3 + $0x28] sm:$0xff]  ;;  %v950_v11 = vld [vmem:[%s1793_s3 + $0x70] sm:$0xff] }
 0x2d8   :  { %v928_v3 = vsub.f32 %v896_v57, %v912_v46  ;;  %817 = vst.msk [vmem:[#allocation4 + $0x60] sm:$0xff] %vm24_vm1, %v801_v51  ;;  %v395_v23 = vmul.f32 1.442695, %v366_v50  ;;  %v909_v33 = vld [vmem:[#allocation4 + $0x28] sm:$0xff]  ;;  %v827_v21 = vld [vmem:[#allocation2 + $0x18] sm:$0xff] }
 0x2d9   :  { %v958_v5 = vmul.f32 %v942_v25, %v926_v41  ;;  %594 = vst.msk [vmem:[#allocation3] sm:$0xff] %vm24_vm1, %v577_v52  ;;  %v786_v31 = vpop.xlane.xlu0 %785 }
 0x2da   :  { %v1120_v47 = vpop.eup %1119  ;;  %v960_v53 = vmul.f32 %v944_v45, %v928_v3  ;;  %v803_v19 = vadd.f32 %v786_v31, %v675_v40  ;;  %v552_v6 = vpop.xlane.xlu1 %551  ;;  %v352_v31 = vld [vmem:[#allocation3 + $0x78] sm:$0xff] }
 0x2db   :  { %v1122_v16 = vpop.eup %1121  ;;  %974 = vst.msk [vmem:[%s1794_s4 + $0x30] sm:$0xff] %vm24_vm1, %v958_v5  ;;  %v914_v55 = vld [vmem:[#allocation4 + $0x50] sm:$0xff]  ;;  %v881_v61 = vmul.f32 0.6931472, %v1120_v47  ;;  %v580_v9 = vadd.f32 %v552_v6, %v404_v28 }
 0x2dc   :  { %976 = vst.msk [vmem:[%s1794_s4 + $0x40] sm:$0xff] %vm24_vm1, %v960_v53  ;;  %v930_v1 = vsub.f32 %v898_v59, %v914_v55  ;;  %819 = vst.msk [vmem:[#allocation4 + $0x70] sm:$0xff] %vm24_vm1, %v803_v19  ;;  %v1124_v42 = vpop.eup %1123  ;;  %v885_v10 = vmul.f32 0.6931472, %v1122_v16  ;;  %v824_v19 = vld [vmem:[#allocation2] sm:$0xff]  ;;  %v350_v55 = vld [vmem:[#allocation3 + $0x68] sm:$0xff] }
 0x2dd   :  { %v900_v7 = vadd.f32 %v881_v61, %v836_v38  ;;  %597 = vst.msk [vmem:[#allocation3 + $0x18] sm:$0xff] %vm24_vm1, %v580_v9  ;;  %v410_v56 = vmul.f32 %v1124_v42, %v346_v37  ;;  %v904_v9 = vld [vmem:[#allocation4] sm:$0xff]  ;;  %v670_v37 = vld [vmem:[#allocation4 + $0x48] sm:$0xff] }
 0x2de   :  { %v1126_v4 = vpop.eup %1125  ;;  %v962_v0 = vmul.f32 %v946_v30, %v930_v1  ;;  %v568_v48 = vpop.xlane.xlu1 %567  ;;  %v902_v25 = vadd.f32 %v885_v10, %v838_v26 }
 0x2df   :  { %v867_v39 = vmul.f32 0.6931472, %v1126_v4  ;;  %v916_v36 = vld [vmem:[#allocation4 + $0x60] sm:$0xff]  ;;  %v588_v18 = vadd.f32 %v568_v48, %v412_v62  ;;  %v1128_v34 = vpop.eup %1127  ;;  %v939_v62 = vld [vmem:[%s1793_s3 + $0x18] sm:$0xff] }
 0x2e0   :  { %978 = vst.msk [vmem:[%s1794_s4 + $0x50] sm:$0xff] %vm24_vm1, %v962_v0  ;;  %v932_v22 = vsub.f32 %v900_v7, %v916_v36  ;;  %v840_v2 = vld [vmem:[#allocation3] sm:$0xff]  ;;  %v405_v40 = vmul.f32 %v1128_v34, %v341_v20  ;;  %v1130_v44 = vpop.eup %1129  ;;  %v907_v7 = vld [vmem:[#allocation4 + $0x18] sm:$0xff]  ;;  %v833_v20 = vld [vmem:[#allocation2 + $0x48] sm:$0xff] }
 0x2e1   :  { %v893_v24 = vadd.f32 %v867_v39, %v829_v49  ;;  %1133 = vlog2.f32 %v840_v2  ;;  %605 = vst.msk [vmem:[#allocation3 + $0x58] sm:$0xff] %vm24_vm1, %v588_v18  ;;  %v408_v15 = vmul.f32 %v1130_v44, %v344_v60  ;;  %v1132_v63 = vpop.eup %1131  ;;  %v676_v60 = vld [vmem:[#allocation4 + $0x78] sm:$0xff] }
 0x2e2   :  { %v964_v35 = vmul.f32 %v948_v58, %v932_v22  ;;  %v564_v57 = vpop.xlane.xlu1 %563  ;;  %1135 = vpow2.f32 %v395_v23  ;;  %v416_v6 = vmul.f32 %v1132_v63, %v352_v31  ;;  %v672_v23 = vld [vmem:[#allocation4 + $0x58] sm:$0xff] }
 0x2e3   :  { %v925_v51 = vsub.f32 %v893_v24, %v909_v33  ;;  %v918_v27 = vld [vmem:[#allocation4 + $0x70] sm:$0xff]  ;;  %v586_v41 = vadd.f32 %v564_v57, %v410_v56  ;;  %v911_v31 = vld [vmem:[#allocation4 + $0x38] sm:$0xff] }
 0x2e4   :  { %980 = vst.msk [vmem:[%s1794_s4 + $0x60] sm:$0xff] %vm24_vm1, %v964_v35  ;;  %v934_v45 = vsub.f32 %v902_v25, %v918_v27  ;;  %v843_v46 = vld [vmem:[#allocation3 + $0x18] sm:$0xff]  ;;  %v674_v35 = vld [vmem:[#allocation4 + $0x68] sm:$0xff] }
 0x2e5   :  { %v957_v52 = vmul.f32 %v941_v17, %v925_v51  ;;  %1137 = vlog2.f32 %v843_v46  ;;  %603 = vst.msk [vmem:[#allocation3 + $0x48] sm:$0xff] %vm24_vm1, %v586_v41  ;;  %v828_v17 = vld [vmem:[#allocation2 + $0x20] sm:$0xff] }
 0x2e6   :  { %v966_v13 = vmul.f32 %v950_v11, %v934_v45  ;;  %v554_v54 = vpop.xlane.xlu1 %553  ;;  %v908_v51 = vld [vmem:[#allocation4 + $0x20] sm:$0xff]  ;;  %v831_v45 = vld [vmem:[#allocation2 + $0x38] sm:$0xff] }
 0x2e7   :  { %973 = vst.msk [vmem:[%s1794_s4 + $0x28] sm:$0xff] %vm24_vm1, %v957_v52  ;;  %v581_v3 = vadd.f32 %v554_v54, %v405_v40  ;;  %v940_v11 = vld [vmem:[%s1793_s3 + $0x20] sm:$0xff] }
 0x2e8   :  { %982 = vst.msk [vmem:[%s1794_s4 + $0x70] sm:$0xff] %vm24_vm1, %v966_v13  ;;  %v851_v29 = vld [vmem:[#allocation3 + $0x58] sm:$0xff]  ;;  %v945_v13 = vld [vmem:[%s1793_s3 + $0x48] sm:$0xff] }
 0x2e9   :  { %598 = vst.msk [vmem:[#allocation3 + $0x20] sm:$0xff] %vm24_vm1, %v581_v3 }
 0x2ea   :  { %v560_v5 = vpop.xlane.xlu1 %559 }
 0x2eb   :  { %v1134_v28 = vpop.eup %1133  ;;  %v584_v47 = vadd.f32 %v560_v5, %v408_v15  ;;  %v835_v5 = vld [vmem:[#allocation2 + $0x58] sm:$0xff] }
 0x2ec   :  { %v857_v53 = vmul.f32 0.6931472, %v1134_v28  ;;  %v849_v59 = vld [vmem:[#allocation3 + $0x48] sm:$0xff]  ;;  %v1136_v12 = vpop.eup %1135  ;;  %v943_v28 = vld [vmem:[%s1793_s3 + $0x38] sm:$0xff] }
 0x2ed   :  { %601 = vst.msk [vmem:[#allocation3 + $0x38] sm:$0xff] %vm24_vm1, %v584_v47  ;;  %1139 = vlog2.f32 %v849_v59  ;;  %v414_v42 = vmul.f32 %v1136_v12, %v350_v55 }
 0x2ee   :  { %v888_v16 = vadd.f32 %v857_v53, %v824_v19  ;;  %v576_v30 = vpop.xlane.xlu1 %575 }
 0x2ef   :  { %v1138_v61 = vpop.eup %1137  ;;  %v592_v14 = vadd.f32 %v576_v30, %v416_v6 }
 0x2f0   :  { %v920_v43 = vsub.f32 %v888_v16, %v904_v9  ;;  %v863_v38 = vmul.f32 0.6931472, %v1138_v61  ;;  %v844_v8 = vld [vmem:[#allocation3 + $0x20] sm:$0xff]  ;;  %v947_v16 = vld [vmem:[%s1793_s3 + $0x58] sm:$0xff] }
 0x2f1   :  { %1141 = vlog2.f32 %v844_v8  ;;  %609 = vst.msk [vmem:[#allocation3 + $0x78] sm:$0xff] %vm24_vm1, %v592_v14 }
 0x2f2   :  { %v952_v50 = vmul.f32 %v936_v32, %v920_v43  ;;  %v891_v1 = vadd.f32 %v863_v38, %v827_v21  ;;  %1143 = vlog2.f32 %v851_v29  ;;  %v837_v43 = vld [vmem:[#allocation2 + $0x68] sm:$0xff]  ;;  %v839_v38 = vld [vmem:[#allocation2 + $0x78] sm:$0xff] }
 0x2f3   :  { %v572_v4 = vpop.xlane.xlu1 %571  ;;  %v949_v21 = vld [vmem:[%s1793_s3 + $0x68] sm:$0xff] }
 0x2f4   :  { %968 = vst.msk [vmem:[%s1794_s4] sm:$0xff] %vm24_vm1, %v952_v50  ;;  %v923_v0 = vsub.f32 %v891_v1, %v907_v7  ;;  %v847_v10 = vld [vmem:[#allocation3 + $0x38] sm:$0xff]  ;;  %v590_v48 = vadd.f32 %v572_v4, %v414_v42 }
 0x2f5   :  { %1145 = vlog2.f32 %v847_v10  ;;  %v951_v7 = vld [vmem:[%s1793_s3 + $0x78] sm:$0xff] }
 0x2f6   :  { %v955_v39 = vmul.f32 %v939_v62, %v923_v0  ;;  %607 = vst.msk [vmem:[#allocation3 + $0x68] sm:$0xff] %vm24_vm1, %v590_v48 }
 0x2f7   :  { %v776_v58 = vpop.xlane.xlu1 %775  ;;  %v1140_v49 = vpop.eup %1139 }
 0x2f8   :  { %971 = vst.msk [vmem:[%s1794_s4 + $0x18] sm:$0xff] %vm24_vm1, %v955_v39  ;;  %v855_v36 = vld [vmem:[#allocation3 + $0x78] sm:$0xff]  ;;  %v798_v18 = vadd.f32 %v776_v58, %v670_v37  ;;  %v875_v56 = vmul.f32 0.6931472, %v1140_v49 }
 0x2f9   :  { %1147 = vlog2.f32 %v855_v36 }
 0x2fa   :  { %814 = vst.msk [vmem:[#allocation4 + $0x48] sm:$0xff] %vm24_vm1, %v798_v18  ;;  %v897_v40 = vadd.f32 %v875_v56, %v833_v20 }
 0x2fb   :  { %v1142_v22 = vpop.eup %1141  ;;  %v780_v2 = vpop.xlane.xlu1 %779 }
 0x2fc   :  { %v1144_v26 = vpop.eup %1143  ;;  %v865_v24 = vmul.f32 0.6931472, %v1142_v22  ;;  %v800_v34 = vadd.f32 %v780_v2, %v672_v23 }
 0x2fd   :  { %v853_v33 = vld [vmem:[#allocation3 + $0x68] sm:$0xff]  ;;  %v879_v27 = vmul.f32 0.6931472, %v1144_v26 }
 0x2fe   :  { %v892_v25 = vadd.f32 %v865_v24, %v828_v17  ;;  %1149 = vlog2.f32 %v853_v33  ;;  %816 = vst.msk [vmem:[#allocation4 + $0x58] sm:$0xff] %vm24_vm1, %v800_v34 }
 0x2ff   :  { %v1146_v57 = vpop.eup %1145  ;;  %v784_v41 = vpop.xlane.xlu1 %783  ;;  %v899_v19 = vadd.f32 %v879_v27, %v835_v5 }
 0x300   :  { %v924_v46 = vsub.f32 %v892_v25, %v908_v51  ;;  %v871_v52 = vmul.f32 0.6931472, %v1146_v57  ;;  %v802_v44 = vadd.f32 %v784_v41, %v674_v35 }
 0x301   :  { %v913_v54 = vld [vmem:[#allocation4 + $0x48] sm:$0xff] }
 0x302   :  { %v956_v3 = vmul.f32 %v940_v11, %v924_v46  ;;  %v895_v15 = vadd.f32 %v871_v52, %v831_v45  ;;  %v929_v63 = vsub.f32 %v897_v40, %v913_v54  ;;  %818 = vst.msk [vmem:[#allocation4 + $0x68] sm:$0xff] %vm24_vm1, %v802_v44 }
 0x303   :  { %v788_v47 = vpop.xlane.xlu1 %787  ;;  %v1148_v12 = vpop.eup %1147 }
 0x304   :  { %972 = vst.msk [vmem:[%s1794_s4 + $0x20] sm:$0xff] %vm24_vm1, %v956_v3  ;;  %v927_v53 = vsub.f32 %v895_v15, %v911_v31  ;;  %v961_v59 = vmul.f32 %v945_v13, %v929_v63  ;;  %v804_v6 = vadd.f32 %v788_v47, %v676_v60  ;;  %v887_v29 = vmul.f32 0.6931472, %v1148_v12 }
 0x305   :  { %v915_v30 = vld [vmem:[#allocation4 + $0x58] sm:$0xff] }
 0x306   :  { %v959_v55 = vmul.f32 %v943_v28, %v927_v53  ;;  %977 = vst.msk [vmem:[%s1794_s4 + $0x48] sm:$0xff] %vm24_vm1, %v961_v59  ;;  %v931_v61 = vsub.f32 %v899_v19, %v915_v30  ;;  %820 = vst.msk [vmem:[#allocation4 + $0x78] sm:$0xff] %vm24_vm1, %v804_v6  ;;  %v903_v1 = vadd.f32 %v887_v29, %v839_v38 }
 0x308   :  { %v1150_v9 = vpop.eup %1149  ;;  %975 = vst.msk [vmem:[%s1794_s4 + $0x38] sm:$0xff] %vm24_vm1, %v959_v55  ;;  %v963_v32 = vmul.f32 %v947_v16, %v931_v61 }
 0x309   :  { %v883_v14 = vmul.f32 0.6931472, %v1150_v9  ;;  %v917_v50 = vld [vmem:[#allocation4 + $0x68] sm:$0xff] }
 0x30a   :  { %979 = vst.msk [vmem:[%s1794_s4 + $0x58] sm:$0xff] %vm24_vm1, %v963_v32 }
 0x30b   :  { %v901_v8 = vadd.f32 %v883_v14, %v837_v43 }
 0x30d   :  { %v933_v42 = vsub.f32 %v901_v8, %v917_v50  ;;  %v919_v62 = vld [vmem:[#allocation4 + $0x78] sm:$0xff] }
 0x30e   :  { %v935_v4 = vsub.f32 %v903_v1, %v919_v62 }
 0x30f   :  { %v965_v0 = vmul.f32 %v949_v21, %v933_v42 }
 0x310   :  { %v967_v10 = vmul.f32 %v951_v7, %v935_v4 }
 0x311   :  { %981 = vst.msk [vmem:[%s1794_s4 + $0x68] sm:$0xff] %vm24_vm1, %v965_v0 }
 0x312   :  { %983 = vst.msk [vmem:[%s1794_s4 + $0x78] sm:$0xff] %vm24_vm1, %v967_v10 }

</bundles_post_ra>
